<compile_context>
chip_gen: v7x
topology: tpu7x:2x2x1
jax: 0.10.0
libtpu: 0.0.40
codegen_flags: <defaults>
</compile_context>

<pallas_src>
import functools
import numpy as np
import jax
import jax.numpy as jnp
from jax.experimental import pallas as pl
from jax.experimental.pallas import tpu as pltpu


# ------------------------------ Pallas kernel ------------------------------

def _pref_kernel(pts_ref, vx_ref, vy_ref, vz_ref, out_ref, *,
                 dims_x, dims_y, dims_z, freqs_x, freqs_y, freqs_z,
                 feat_dim, tent_bf16):
    """PREF forward for one tile of TN points (points on the lane axis).

    pts_ref : (3, TN)        f32   point coords in [-1, 1]  (rows: x, y, z)
    v*_ref  : (2*d*F, H*W)   bf16  packed ifft'd phasor volume,
              rows = [real * mult ; imag * mult], mult = 2 for f > 0 folded in,
              frequency-major channels (c = k*F + f)
    out_ref : (F, TN)        f32
    dims_*  : (H, W) of the sampled plane;  freqs_* : d python floats
              already scaled by pi*(T-1)/T.
    """
    pts = pts_ref[...]                 # (3, TN)
    xs = pts[0:1, :]
    ys = pts[1:2, :]
    zs = pts[2:3, :]
    tn = pts.shape[-1]

    cdt = jnp.bfloat16 if tent_bf16 else jnp.float32

    def axis_contrib(v_ref, hcoord, wcoord, fcoord, dims, freqs):
        H, W = dims
        HW = H * W
        d = len(freqs)

        # --- spatial row/col indices generated in-kernel (cheap VPU iota,
        #     replaces the old lane-sparse (H*W, 1) VMEM inputs).
        row = jax.lax.broadcasted_iota(jnp.int32, (HW, tn), 0).astype(jnp.float32)
        # exact floor-divide: margin 0.5/W >> f32 rounding error
        hrow = jnp.floor((row + 0.5) * (1.0 / W))
        wrow = row - hrow * W

        # --- bilinear grid_sample (align_corners=True, zeros padding) as a
        #     "tent" weight matrix (H*W, TN) contracted on the MXU.
        ih = (hcoord + 1.0) * (0.5 * (H - 1))                     # (1, TN)
        iw = (wcoord + 1.0) * (0.5 * (W - 1))
        # subtraction stays in f32 (index magnitude); tent math in cdt
        dh = (hrow - ih).astype(cdt)
        dw = (wrow - iw).astype(cdt)
        wgt_h = jnp.maximum(1.0 - jnp.abs(dh), 0.0)
        wgt_w = jnp.maximum(1.0 - jnp.abs(dw), 0.0)
        wgt = (wgt_h * wgt_w).astype(jnp.bfloat16)                # (HW, TN)

        # fused real|imag sampling matmul (bf16 MXU, f32 accumulation)
        samp = jnp.dot(v_ref[...], wgt,
                       preferred_element_type=jnp.float32)        # (2*d*F, TN)
        dF = d * feat_dim

        # --- batch_irfft twiddle + frequency reduce: only d distinct
        #     frequencies (EUP work is O(d), not O(F*d)); reduction is pure
        #     in-register adds over contiguous F-row blocks.
        contrib = None
        for k, fval in enumerate(freqs):
            re_k = samp[k * feat_dim:(k + 1) * feat_dim, :]       # (F, TN)
            if fval == 0.0:
                term = re_k                                       # cos=1, sin=0
            else:
                im_k = samp[dF + k * feat_dim: dF + (k + 1) * feat_dim, :]
                ang = (fcoord + 1.0) * fval                       # (1, TN)
                term = re_k * jnp.cos(ang) - im_k * jnp.sin(ang)
            contrib = term if contrib is None else contrib + term
        return contrib                                            # (F, TN)

    cx = axis_contrib(vx_ref, ys, zs, xs, dims_x, freqs_x)
    cy = axis_contrib(vy_ref, xs, zs, ys, dims_y, freqs_y)
    cz = axis_contrib(vz_ref, ys, xs, zs, dims_z, freqs_z)

    out_ref[...] = cx + cy + cz                                   # (F, TN) f32


# ------------------------------ glue (plain JAX) ---------------------------

def _softplus(x, beta=10.0, threshold=1.0):
    # torch F.softplus(x, beta=10, threshold=1)
    return jnp.where(x * beta > threshold, x, jnp.log1p(jnp.exp(x * beta)) / beta)


def _has_bf16_valu():
    """bf16 tent-build only on chips with a bf16 VALU (v6e / v7x)."""
    try:
        kind = jax.devices()[0].device_kind.lower()
    except Exception:
        return True
    return not any(s in kind for s in ("v2", "v3", "v4", "v5"))


def init_pref_params(key, feat_dim, linear_res, reduced_res):
    """Deterministic synthetic init of the PREF parameters (same shapes as the
    torch module: complex phasor volumes Fx/Fy/Fz + scalar alpha_params)."""
    Nx, Ny, Nz = linear_res
    d1, d2, d3 = reduced_res
    ks = jax.random.split(key, 6)

    def cplx(kr, ki, shape):
        return (jax.random.normal(kr, shape, jnp.float32)
                + 1j * jax.random.normal(ki, shape, jnp.float32)) * 0.05

    Fx = cplx(ks[0], ks[1], (1, feat_dim, d1, Ny, Nz))   # (1, F, d1, Ny, Nz)
    Fy = cplx(ks[2], ks[3], (1, feat_dim, Nx, d2, Nz))   # (1, F, Nx, d2, Nz)
    Fz = cplx(ks[4], ks[5], (1, feat_dim, Nx, Ny, d3))   # (1, F, Nx, Ny, d3)
    # 'linear' frequency sampling: axis[i] = [0, 1, ..., d-1]
    kx = jnp.arange(d1, dtype=jnp.float32)
    ky = jnp.arange(d2, dtype=jnp.float32)
    kz = jnp.arange(d3, dtype=jnp.float32)
    alpha_params = jnp.array(0.001, jnp.float32)
    return dict(alpha_params=alpha_params, Fx=Fx, Fy=Fy, Fz=Fz,
                kx=kx, ky=ky, kz=kz, linear_res=tuple(linear_res))


def preprocess_phasor(params):
    """alpha scaling + ifftn (data independent part of compute_fft)."""
    Nx, Ny, Nz = params["linear_res"]
    alpha = _softplus(params["alpha_params"])
    Fx = params["Fx"] * alpha
    Fy = params["Fy"] * alpha
    Fz = params["Fz"] * alpha
    # torch.fft.ifftn(..., norm='forward') == unnormalised inverse FFT
    Fx_i = jnp.fft.ifftn(Fx, axes=(3, 4)) * (Ny * Nz)
    Fy_i = jnp.fft.ifftn(Fy, axes=(2, 4)) * (Nx * Nz)
    Fz_i = jnp.fft.ifftn(Fz, axes=(2, 3)) * (Nx * Ny)
    return Fx_i, Fy_i, Fz_i


def pref_forward(points, params, *, bound=1.0, tile_n=None, tent_bf16=None):
    """Pallas PREF forward.

    tile_n: multiple of 128 (sweepable; default = smallest multiple of 128
    >= N, capped at 512). tent_bf16: None = auto (bf16 on v6e/v7x only).
    """
    feat_dim = params["Fx"].shape[1]
    Nx, Ny, Nz = params["linear_res"]
    d1 = params["Fx"].shape[2]
    d2 = params["Fy"].shape[3]
    d3 = params["Fz"].shape[4]

    if tent_bf16 is None:
        tent_bf16 = _has_bf16_valu()

    Fx_i, Fy_i, Fz_i = preprocess_phasor(params)

    def pack_volume(vol, ff):
        # vol: (d*F, H, W) complex, frequency-major channels (c = k*F + f).
        # Fold the x2-for-f>0 irfft factor per channel; pack [re ; im] in bf16.
        # NOTE: bf16 packing (~2^-8 rel) is the dominant error source; fine
        # for the 1e-2 tolerance of this module.
        dF, H, W = vol.shape
        mult = jnp.where(jnp.repeat(ff, feat_dim) > 0, 2.0, 1.0)[:, None]
        vre = jnp.real(vol).reshape(dF, H * W) * mult
        vim = jnp.imag(vol).reshape(dF, H * W) * mult
        return jnp.concatenate([vre, vim], axis=0).astype(jnp.bfloat16)

    # axis x: volume (d1*F, Ny, Nz) sampled at (h=ys, w=zs), irfft along x (Nx)
    vx = pack_volume(jnp.transpose(Fx_i[0], (1, 0, 2, 3))
                     .reshape(d1 * feat_dim, Ny, Nz), params["kx"])
    # axis y: volume (d2*F, Nx, Nz) sampled at (h=xs, w=zs), irfft along y (Ny)
    vy = pack_volume(jnp.transpose(Fy_i[0], (2, 0, 1, 3))
                     .reshape(d2 * feat_dim, Nx, Nz), params["ky"])
    # axis z: volume (d3*F, Ny, Nx) sampled at (h=ys, w=xs), irfft along z (Nz)
    vz = pack_volume(jnp.transpose(Fz_i[0], (3, 0, 2, 1))
                     .reshape(d3 * feat_dim, Ny, Nx), params["kz"])

    def freq_tuple(ff, T):
        # compile-time constants: angle = (coord+1) * pi*(T-1)/T * f
        ffnp = np.asarray(jax.device_get(ff), dtype=np.float64)
        return tuple(float(np.pi * (T - 1.0) / T * f) for f in ffnp)

    freqs_x = freq_tuple(params["kx"], Nx)
    freqs_y = freq_tuple(params["ky"], Ny)
    freqs_z = freq_tuple(params["kz"], Nz)

    pts = (points / bound).astype(jnp.float32)
    n = pts.shape[0]
    if tile_n is None:
        tile_n = min(512, 128 * int(pl.cdiv(n, 128)))
    assert tile_n % 128 == 0
    n_pad = int(tile_n * pl.cdiv(n, tile_n))
    pts = jnp.pad(pts, ((0, n_pad - n), (0, 0))).T                # (3, n_pad)

    # explicit VMEM budget with headroom (residents are double-buffered by
    # default; tent-build temporaries scale as H*W x TN).
    max_hw = max(Ny * Nz, Nx * Nz, Ny * Nx)
    resident_bytes = 2 * 2 * int(vx.size + vy.size + vz.size)      # bf16, 2-buf
    io_bytes = 2 * 4 * (3 + feat_dim) * tile_n * 2                 # pts + out
    wgt_bytes = 6 * max_hw * tile_n * 4                            # temporaries
    vmem_limit = int(min(96 << 20,
                         max(32 << 20,
                             resident_bytes + io_bytes + wgt_bytes + (4 << 20))))

    kernel = functools.partial(
        _pref_kernel,
        dims_x=(Ny, Nz), dims_y=(Nx, Nz), dims_z=(Ny, Nx),
        freqs_x=freqs_x, freqs_y=freqs_y, freqs_z=freqs_z,
        feat_dim=feat_dim, tent_bf16=bool(tent_bf16))

    out = pl.pallas_call(
        kernel,
        out_shape=jax.ShapeDtypeStruct((feat_dim, n_pad), jnp.float32),
        grid=(n_pad // tile_n,),
        in_specs=[pl.BlockSpec((3, tile_n), lambda i: (0, i)),
                  # grid-invariant resident volumes (constant index_map)
                  pl.BlockSpec(vx.shape, lambda i: (0, 0)),
                  pl.BlockSpec(vy.shape, lambda i: (0, 0)),
                  pl.BlockSpec(vz.shape, lambda i: (0, 0))],
        out_specs=pl.BlockSpec((feat_dim, tile_n), lambda i: (0, i)),
        compiler_params=pltpu.CompilerParams(
            dimension_semantics=("parallel",),
            vmem_limit_bytes=vmem_limit),
    )(pts, vx, vy, vz)

    return out[:, :n].T        # (N, F) == torch `feature.T`


# --------------------- independent pure-JAX reference ----------------------

def _grid_sample_bilinear_ref(vol, hc, wc):
    # vol: (C, H, W) complex; align_corners=True, zero padding; coords in [-1,1]
    C, H, W = vol.shape
    ih = (hc + 1.0) * 0.5 * (H - 1)
    iw = (wc + 1.0) * 0.5 * (W - 1)
    ih0f = jnp.floor(ih)
    iw0f = jnp.floor(iw)
    wh = ih - ih0f
    ww = iw - iw0f
    ih0 = ih0f.astype(jnp.int32)
    iw0 = iw0f.astype(jnp.int32)
    ih1 = jnp.clip(ih0 + 1, 0, H - 1)
    iw1 = jnp.clip(iw0 + 1, 0, W - 1)
    v00 = vol[:, ih0, iw0]
    v01 = vol[:, ih0, iw1]
    v10 = vol[:, ih1, iw0]
    v11 = vol[:, ih1, iw1]
    return (v00 * ((1 - wh) * (1 - ww)) + v01 * ((1 - wh) * ww)
            + v10 * (wh * (1 - ww)) + v11 * (wh * ww))          # (C, N)


def _batch_irfft_ref(ph, coord, ff, T):
    # ph: (F, d, N) complex; coord: (N,) in [-1, 1]
    xx = (coord + 1.0) * 0.5
    xx = xx * (T - 1) / T
    tw = jnp.exp(2j * np.pi * xx[:, None] * ff[None, :])
    tw = tw * jnp.where(ff > 0, 2.0, 1.0)[None, :]
    tw = jnp.transpose(tw)[None]              # (1, d, N)
    return (ph.real * tw.real).sum(1) - (ph.imag * tw.imag).sum(1)   # (F, N)


def pref_reference(points, params, bound=1.0):
    feat_dim = params["Fx"].shape[1]
    Nx, Ny, Nz = params["linear_res"]
    d1 = params["Fx"].shape[2]
    d2 = params["Fy"].shape[3]
    d3 = params["Fz"].shape[4]
    Fx_i, Fy_i, Fz_i = preprocess_phasor(params)
    pts = points / bound
    xs, ys, zs = pts[:, 0], pts[:, 1], pts[:, 2]
    n = pts.shape[0]
    fx = _grid_sample_bilinear_ref(
        Fx_i[0].reshape(feat_dim * d1, Ny, Nz), ys, zs).reshape(feat_dim, d1, n)
    fy = _grid_sample_bilinear_ref(
        jnp.transpose(Fy_i[0], (0, 2, 1, 3)).reshape(feat_dim * d2, Nx, Nz),
        xs, zs).reshape(feat_dim, d2, n)
    fz = _grid_sample_bilinear_ref(
        jnp.transpose(Fz_i[0], (0, 3, 2, 1)).reshape(feat_dim * d3, Ny, Nx),
        ys, xs).reshape(feat_dim, d3, n)
    fxx = _batch_irfft_ref(fx, xs, params["kx"], Nx)
    fyy = _batch_irfft_ref(fy, ys, params["ky"], Ny)
    fzz = _batch_irfft_ref(fz, zs, params["kz"], Nz)
    return (fxx + fyy + fzz).T                # (N, F)


# ------------------------------------ main ---------------------------------

if __name__ == "__main__":
    key = jax.random.PRNGKey(0)
    k_param, k_pts = jax.random.split(key)

    feat_dim = 16
    linear_res = (16, 16, 16)     # Nx, Ny, Nz (2D full-spectrum resolutions)
    reduced_res = (2, 2, 2)       # d1, d2, d3 (1D reduced frequencies)

    params = init_pref_params(k_param, feat_dim, linear_res, reduced_res)

    n_pts = 200
    points = jax.random.uniform(k_pts, (n_pts, 3), jnp.float32,
                                minval=-1.0, maxval=1.0)

    out = jax.block_until_ready(pref_forward(points, params, bound=1.0))
    assert out.shape == (n_pts, feat_dim)

    ref = jax.block_until_ready(pref_reference(points, params, bound=1.0))
    err = float(jnp.max(jnp.abs(out - ref)))
    scale = float(jnp.max(jnp.abs(ref))) + 1e-6
    assert err <= 1e-2 * scale + 1e-4, f"mismatch: max|diff|={err}, scale={scale}"

    print("KERNEL_OK")
</pallas_src>

<mosaic_0001>
module attributes {stable_mosaic.version = 11 : i64} {
  func.func @_pref_kernel(%arg0: i32, %arg1: memref<3x256xf32, #tpu.memory_space<vmem>>, %arg2: memref<64x256xbf16, #tpu.memory_space<vmem>>, %arg3: memref<64x256xbf16, #tpu.memory_space<vmem>>, %arg4: memref<64x256xbf16, #tpu.memory_space<vmem>>, %arg5: memref<16x256xf32, #tpu.memory_space<vmem>>) attributes {dimension_semantics = [#tpu.dimension_semantics<parallel>], iteration_bounds = array<i64: 1>, scalar_prefetch = 0 : i64, scratch_operands = 0 : i64, tpu.core_type = #tpu.core_type<tc>, window_params = [{transform_indices = @transform_0, window_bounds = array<i64: 3, 256>}, {pipeline_mode = #tpu.pipeline_mode<synchronous>, transform_indices = @transform_1, window_bounds = array<i64: 64, 256>}, {pipeline_mode = #tpu.pipeline_mode<synchronous>, transform_indices = @transform_2, window_bounds = array<i64: 64, 256>}, {pipeline_mode = #tpu.pipeline_mode<synchronous>, transform_indices = @transform_3, window_bounds = array<i64: 64, 256>}, {transform_indices = @transform_4, window_bounds = array<i64: 16, 256>}]} {
    %c0 = arith.constant 0 : index
    %c0_0 = arith.constant 0 : index
    %0 = vector.load %arg1[%c0, %c0_0] : memref<3x256xf32, #tpu.memory_space<vmem>>, vector<3x256xf32>
    %1 = vector.extract_strided_slice %0 {offsets = [0, 0], sizes = [1, 256], strides = [1, 1]} : vector<3x256xf32> to vector<1x256xf32>
    %2 = vector.extract_strided_slice %0 {offsets = [1, 0], sizes = [1, 256], strides = [1, 1]} : vector<3x256xf32> to vector<1x256xf32>
    %3 = vector.extract_strided_slice %0 {offsets = [2, 0], sizes = [1, 256], strides = [1, 1]} : vector<3x256xf32> to vector<1x256xf32>
    %4 = tpu.iota {dimensions = array<i32: 0>} : vector<256x256xi32>
    %5 = arith.sitofp %4 : vector<256x256xi32> to vector<256x256xf32>
    %cst = arith.constant 5.000000e-01 : f32
    %6 = vector.broadcast %cst : f32 to vector<256x256xf32>
    %7 = arith.addf %5, %6 : vector<256x256xf32>
    %cst_1 = arith.constant 6.250000e-02 : f32
    %8 = vector.broadcast %cst_1 : f32 to vector<256x256xf32>
    %9 = arith.mulf %7, %8 : vector<256x256xf32>
    %10 = math.floor %9 : vector<256x256xf32>
    %cst_2 = arith.constant 1.600000e+01 : f32
    %11 = vector.broadcast %cst_2 : f32 to vector<256x256xf32>
    %12 = arith.mulf %10, %11 : vector<256x256xf32>
    %13 = arith.subf %5, %12 : vector<256x256xf32>
    %cst_3 = arith.constant 1.000000e+00 : f32
    %14 = vector.broadcast %cst_3 : f32 to vector<1x256xf32>
    %15 = arith.addf %2, %14 : vector<1x256xf32>
    %cst_4 = arith.constant 7.500000e+00 : f32
    %16 = vector.broadcast %cst_4 : f32 to vector<1x256xf32>
    %17 = arith.mulf %15, %16 : vector<1x256xf32>
    %cst_5 = arith.constant 1.000000e+00 : f32
    %18 = vector.broadcast %cst_5 : f32 to vector<1x256xf32>
    %19 = arith.addf %3, %18 : vector<1x256xf32>
    %cst_6 = arith.constant 7.500000e+00 : f32
    %20 = vector.broadcast %cst_6 : f32 to vector<1x256xf32>
    %21 = arith.mulf %19, %20 : vector<1x256xf32>
    %22 = vector.broadcast %17 : vector<1x256xf32> to vector<256x256xf32>
    %23 = arith.subf %10, %22 : vector<256x256xf32>
    %24 = arith.truncf %23 : vector<256x256xf32> to vector<256x256xbf16>
    %25 = vector.broadcast %21 : vector<1x256xf32> to vector<256x256xf32>
    %26 = arith.subf %13, %25 : vector<256x256xf32>
    %27 = arith.truncf %26 : vector<256x256xf32> to vector<256x256xbf16>
    %28 = math.absf %24 : vector<256x256xbf16>
    %cst_7 = arith.constant 1.000000e+00 : bf16
    %29 = vector.broadcast %cst_7 : bf16 to vector<256x256xbf16>
    %30 = arith.subf %29, %28 : vector<256x256xbf16>
    %cst_8 = arith.constant 0.000000e+00 : bf16
    %31 = vector.broadcast %cst_8 : bf16 to vector<256x256xbf16>
    %32 = arith.maximumf %30, %31 : vector<256x256xbf16>
    %33 = math.absf %27 : vector<256x256xbf16>
    %cst_9 = arith.constant 1.000000e+00 : bf16
    %34 = vector.broadcast %cst_9 : bf16 to vector<256x256xbf16>
    %35 = arith.subf %34, %33 : vector<256x256xbf16>
    %cst_10 = arith.constant 0.000000e+00 : bf16
    %36 = vector.broadcast %cst_10 : bf16 to vector<256x256xbf16>
    %37 = arith.maximumf %35, %36 : vector<256x256xbf16>
    %38 = arith.mulf %32, %37 : vector<256x256xbf16>
    %c0_11 = arith.constant 0 : index
    %c0_12 = arith.constant 0 : index
    %39 = vector.load %arg2[%c0_11, %c0_12] : memref<64x256xbf16, #tpu.memory_space<vmem>>, vector<64x256xbf16>
    %cst_13 = arith.constant dense<0.000000e+00> : vector<64x256xf32>
    %40 = tpu.matmul %39, %38, %cst_13 {dimension_numbers = #tpu.dot_dimension_numbers<[1], [0], [0], [1], [0, 0, 1, 1], [], []>} : vector<64x256xbf16>, vector<256x256xbf16>, vector<64x256xf32> -> vector<64x256xf32>
    %41 = vector.extract_strided_slice %40 {offsets = [0, 0], sizes = [16, 256], strides = [1, 1]} : vector<64x256xf32> to vector<16x256xf32>
    %42 = vector.extract_strided_slice %40 {offsets = [16, 0], sizes = [16, 256], strides = [1, 1]} : vector<64x256xf32> to vector<16x256xf32>
    %43 = vector.extract_strided_slice %40 {offsets = [48, 0], sizes = [16, 256], strides = [1, 1]} : vector<64x256xf32> to vector<16x256xf32>
    %cst_14 = arith.constant 1.000000e+00 : f32
    %44 = vector.broadcast %cst_14 : f32 to vector<1x256xf32>
    %45 = arith.addf %1, %44 : vector<1x256xf32>
    %cst_15 = arith.constant 2.94524312 : f32
    %46 = vector.broadcast %cst_15 : f32 to vector<1x256xf32>
    %47 = arith.mulf %45, %46 : vector<1x256xf32>
    %48 = math.cos %47 : vector<1x256xf32>
    %49 = vector.broadcast %48 : vector<1x256xf32> to vector<16x256xf32>
    %50 = arith.mulf %42, %49 : vector<16x256xf32>
    %51 = math.sin %47 : vector<1x256xf32>
    %52 = vector.broadcast %51 : vector<1x256xf32> to vector<16x256xf32>
    %53 = arith.mulf %43, %52 : vector<16x256xf32>
    %54 = arith.subf %50, %53 : vector<16x256xf32>
    %55 = arith.addf %41, %54 : vector<16x256xf32>
    %56 = tpu.iota {dimensions = array<i32: 0>} : vector<256x256xi32>
    %57 = arith.sitofp %56 : vector<256x256xi32> to vector<256x256xf32>
    %cst_16 = arith.constant 5.000000e-01 : f32
    %58 = vector.broadcast %cst_16 : f32 to vector<256x256xf32>
    %59 = arith.addf %57, %58 : vector<256x256xf32>
    %cst_17 = arith.constant 6.250000e-02 : f32
    %60 = vector.broadcast %cst_17 : f32 to vector<256x256xf32>
    %61 = arith.mulf %59, %60 : vector<256x256xf32>
    %62 = math.floor %61 : vector<256x256xf32>
    %cst_18 = arith.constant 1.600000e+01 : f32
    %63 = vector.broadcast %cst_18 : f32 to vector<256x256xf32>
    %64 = arith.mulf %62, %63 : vector<256x256xf32>
    %65 = arith.subf %57, %64 : vector<256x256xf32>
    %cst_19 = arith.constant 1.000000e+00 : f32
    %66 = vector.broadcast %cst_19 : f32 to vector<1x256xf32>
    %67 = arith.addf %1, %66 : vector<1x256xf32>
    %cst_20 = arith.constant 7.500000e+00 : f32
    %68 = vector.broadcast %cst_20 : f32 to vector<1x256xf32>
    %69 = arith.mulf %67, %68 : vector<1x256xf32>
    %cst_21 = arith.constant 1.000000e+00 : f32
    %70 = vector.broadcast %cst_21 : f32 to vector<1x256xf32>
    %71 = arith.addf %3, %70 : vector<1x256xf32>
    %cst_22 = arith.constant 7.500000e+00 : f32
    %72 = vector.broadcast %cst_22 : f32 to vector<1x256xf32>
    %73 = arith.mulf %71, %72 : vector<1x256xf32>
    %74 = vector.broadcast %69 : vector<1x256xf32> to vector<256x256xf32>
    %75 = arith.subf %62, %74 : vector<256x256xf32>
    %76 = arith.truncf %75 : vector<256x256xf32> to vector<256x256xbf16>
    %77 = vector.broadcast %73 : vector<1x256xf32> to vector<256x256xf32>
    %78 = arith.subf %65, %77 : vector<256x256xf32>
    %79 = arith.truncf %78 : vector<256x256xf32> to vector<256x256xbf16>
    %80 = math.absf %76 : vector<256x256xbf16>
    %cst_23 = arith.constant 1.000000e+00 : bf16
    %81 = vector.broadcast %cst_23 : bf16 to vector<256x256xbf16>
    %82 = arith.subf %81, %80 : vector<256x256xbf16>
    %cst_24 = arith.constant 0.000000e+00 : bf16
    %83 = vector.broadcast %cst_24 : bf16 to vector<256x256xbf16>
    %84 = arith.maximumf %82, %83 : vector<256x256xbf16>
    %85 = math.absf %79 : vector<256x256xbf16>
    %cst_25 = arith.constant 1.000000e+00 : bf16
    %86 = vector.broadcast %cst_25 : bf16 to vector<256x256xbf16>
    %87 = arith.subf %86, %85 : vector<256x256xbf16>
    %cst_26 = arith.constant 0.000000e+00 : bf16
    %88 = vector.broadcast %cst_26 : bf16 to vector<256x256xbf16>
    %89 = arith.maximumf %87, %88 : vector<256x256xbf16>
    %90 = arith.mulf %84, %89 : vector<256x256xbf16>
    %c0_27 = arith.constant 0 : index
    %c0_28 = arith.constant 0 : index
    %91 = vector.load %arg3[%c0_27, %c0_28] : memref<64x256xbf16, #tpu.memory_space<vmem>>, vector<64x256xbf16>
    %cst_29 = arith.constant dense<0.000000e+00> : vector<64x256xf32>
    %92 = tpu.matmul %91, %90, %cst_29 {dimension_numbers = #tpu.dot_dimension_numbers<[1], [0], [0], [1], [0, 0, 1, 1], [], []>} : vector<64x256xbf16>, vector<256x256xbf16>, vector<64x256xf32> -> vector<64x256xf32>
    %93 = vector.extract_strided_slice %92 {offsets = [0, 0], sizes = [16, 256], strides = [1, 1]} : vector<64x256xf32> to vector<16x256xf32>
    %94 = vector.extract_strided_slice %92 {offsets = [16, 0], sizes = [16, 256], strides = [1, 1]} : vector<64x256xf32> to vector<16x256xf32>
    %95 = vector.extract_strided_slice %92 {offsets = [48, 0], sizes = [16, 256], strides = [1, 1]} : vector<64x256xf32> to vector<16x256xf32>
    %cst_30 = arith.constant 1.000000e+00 : f32
    %96 = vector.broadcast %cst_30 : f32 to vector<1x256xf32>
    %97 = arith.addf %2, %96 : vector<1x256xf32>
    %cst_31 = arith.constant 2.94524312 : f32
    %98 = vector.broadcast %cst_31 : f32 to vector<1x256xf32>
    %99 = arith.mulf %97, %98 : vector<1x256xf32>
    %100 = math.cos %99 : vector<1x256xf32>
    %101 = vector.broadcast %100 : vector<1x256xf32> to vector<16x256xf32>
    %102 = arith.mulf %94, %101 : vector<16x256xf32>
    %103 = math.sin %99 : vector<1x256xf32>
    %104 = vector.broadcast %103 : vector<1x256xf32> to vector<16x256xf32>
    %105 = arith.mulf %95, %104 : vector<16x256xf32>
    %106 = arith.subf %102, %105 : vector<16x256xf32>
    %107 = arith.addf %93, %106 : vector<16x256xf32>
    %108 = tpu.iota {dimensions = array<i32: 0>} : vector<256x256xi32>
    %109 = arith.sitofp %108 : vector<256x256xi32> to vector<256x256xf32>
    %cst_32 = arith.constant 5.000000e-01 : f32
    %110 = vector.broadcast %cst_32 : f32 to vector<256x256xf32>
    %111 = arith.addf %109, %110 : vector<256x256xf32>
    %cst_33 = arith.constant 6.250000e-02 : f32
    %112 = vector.broadcast %cst_33 : f32 to vector<256x256xf32>
    %113 = arith.mulf %111, %112 : vector<256x256xf32>
    %114 = math.floor %113 : vector<256x256xf32>
    %cst_34 = arith.constant 1.600000e+01 : f32
    %115 = vector.broadcast %cst_34 : f32 to vector<256x256xf32>
    %116 = arith.mulf %114, %115 : vector<256x256xf32>
    %117 = arith.subf %109, %116 : vector<256x256xf32>
    %cst_35 = arith.constant 1.000000e+00 : f32
    %118 = vector.broadcast %cst_35 : f32 to vector<1x256xf32>
    %119 = arith.addf %2, %118 : vector<1x256xf32>
    %cst_36 = arith.constant 7.500000e+00 : f32
    %120 = vector.broadcast %cst_36 : f32 to vector<1x256xf32>
    %121 = arith.mulf %119, %120 : vector<1x256xf32>
    %cst_37 = arith.constant 1.000000e+00 : f32
    %122 = vector.broadcast %cst_37 : f32 to vector<1x256xf32>
    %123 = arith.addf %1, %122 : vector<1x256xf32>
    %cst_38 = arith.constant 7.500000e+00 : f32
    %124 = vector.broadcast %cst_38 : f32 to vector<1x256xf32>
    %125 = arith.mulf %123, %124 : vector<1x256xf32>
    %126 = vector.broadcast %121 : vector<1x256xf32> to vector<256x256xf32>
    %127 = arith.subf %114, %126 : vector<256x256xf32>
    %128 = arith.truncf %127 : vector<256x256xf32> to vector<256x256xbf16>
    %129 = vector.broadcast %125 : vector<1x256xf32> to vector<256x256xf32>
    %130 = arith.subf %117, %129 : vector<256x256xf32>
    %131 = arith.truncf %130 : vector<256x256xf32> to vector<256x256xbf16>
    %132 = math.absf %128 : vector<256x256xbf16>
    %cst_39 = arith.constant 1.000000e+00 : bf16
    %133 = vector.broadcast %cst_39 : bf16 to vector<256x256xbf16>
    %134 = arith.subf %133, %132 : vector<256x256xbf16>
    %cst_40 = arith.constant 0.000000e+00 : bf16
    %135 = vector.broadcast %cst_40 : bf16 to vector<256x256xbf16>
    %136 = arith.maximumf %134, %135 : vector<256x256xbf16>
    %137 = math.absf %131 : vector<256x256xbf16>
    %cst_41 = arith.constant 1.000000e+00 : bf16
    %138 = vector.broadcast %cst_41 : bf16 to vector<256x256xbf16>
    %139 = arith.subf %138, %137 : vector<256x256xbf16>
    %cst_42 = arith.constant 0.000000e+00 : bf16
    %140 = vector.broadcast %cst_42 : bf16 to vector<256x256xbf16>
    %141 = arith.maximumf %139, %140 : vector<256x256xbf16>
    %142 = arith.mulf %136, %141 : vector<256x256xbf16>
    %c0_43 = arith.constant 0 : index
    %c0_44 = arith.constant 0 : index
    %143 = vector.load %arg4[%c0_43, %c0_44] : memref<64x256xbf16, #tpu.memory_space<vmem>>, vector<64x256xbf16>
    %cst_45 = arith.constant dense<0.000000e+00> : vector<64x256xf32>
    %144 = tpu.matmul %143, %142, %cst_45 {dimension_numbers = #tpu.dot_dimension_numbers<[1], [0], [0], [1], [0, 0, 1, 1], [], []>} : vector<64x256xbf16>, vector<256x256xbf16>, vector<64x256xf32> -> vector<64x256xf32>
    %145 = vector.extract_strided_slice %144 {offsets = [0, 0], sizes = [16, 256], strides = [1, 1]} : vector<64x256xf32> to vector<16x256xf32>
    %146 = vector.extract_strided_slice %144 {offsets = [16, 0], sizes = [16, 256], strides = [1, 1]} : vector<64x256xf32> to vector<16x256xf32>
    %147 = vector.extract_strided_slice %144 {offsets = [48, 0], sizes = [16, 256], strides = [1, 1]} : vector<64x256xf32> to vector<16x256xf32>
    %cst_46 = arith.constant 1.000000e+00 : f32
    %148 = vector.broadcast %cst_46 : f32 to vector<1x256xf32>
    %149 = arith.addf %3, %148 : vector<1x256xf32>
    %cst_47 = arith.constant 2.94524312 : f32
    %150 = vector.broadcast %cst_47 : f32 to vector<1x256xf32>
    %151 = arith.mulf %149, %150 : vector<1x256xf32>
    %152 = math.cos %151 : vector<1x256xf32>
    %153 = vector.broadcast %152 : vector<1x256xf32> to vector<16x256xf32>
    %154 = arith.mulf %146, %153 : vector<16x256xf32>
    %155 = math.sin %151 : vector<1x256xf32>
    %156 = vector.broadcast %155 : vector<1x256xf32> to vector<16x256xf32>
    %157 = arith.mulf %147, %156 : vector<16x256xf32>
    %158 = arith.subf %154, %157 : vector<16x256xf32>
    %159 = arith.addf %145, %158 : vector<16x256xf32>
    %160 = arith.addf %55, %107 : vector<16x256xf32>
    %161 = arith.addf %160, %159 : vector<16x256xf32>
    %c0_48 = arith.constant 0 : index
    %c0_49 = arith.constant 0 : index
    %162 = vector.load %arg5[%c0_48, %c0_49] : memref<16x256xf32, #tpu.memory_space<vmem>>, vector<16x256xf32>
    tpu.vector_store %arg5[%c0_48, %c0_49], %161 {strides = array<i32>} : memref<16x256xf32, #tpu.memory_space<vmem>>, vector<16x256xf32>,
    return
  }
  func.func @transform_0(%arg0: i32) -> (i32, i32) {
    %c0_i32 = arith.constant 0 : i32
    %c0_i32_0 = arith.constant 0 : i32
    return %c0_i32, %arg0 : i32, i32
  }
  func.func @transform_1(%arg0: i32) -> (i32, i32) {
    %c0_i32 = arith.constant 0 : i32
    %c0_i32_0 = arith.constant 0 : i32
    %c0_i32_1 = arith.constant 0 : i32
    return %c0_i32, %c0_i32_0 : i32, i32
  }
  func.func @transform_2(%arg0: i32) -> (i32, i32) {
    %c0_i32 = arith.constant 0 : i32
    %c0_i32_0 = arith.constant 0 : i32
    %c0_i32_1 = arith.constant 0 : i32
    return %c0_i32, %c0_i32_0 : i32, i32
  }
  func.func @transform_3(%arg0: i32) -> (i32, i32) {
    %c0_i32 = arith.constant 0 : i32
    %c0_i32_0 = arith.constant 0 : i32
    %c0_i32_1 = arith.constant 0 : i32
    return %c0_i32, %c0_i32_0 : i32, i32
  }
  func.func @transform_4(%arg0: i32) -> (i32, i32) {
    %c0_i32 = arith.constant 0 : i32
    %c0_i32_0 = arith.constant 0 : i32
    return %c0_i32, %arg0 : i32, i32
  }
}

</mosaic_0001>

<bundles_post_ra>
// kernel: tpu_custom_call.1
= control target key start
LH: loop header
LB: loop body
LE: loop exit
PB: predicated region body
PF: predicated region fallthrough
CT: control target
= control target key end

     0   :  { %9 = vsyncpa [#allocation3], 0  ;;  %s3361_s0 = inlined_call_operand.hbm [shape: f32[3,256], index: 0, kind: input, shape index: {}]   ;;  %s3362_s1 = inlined_call_operand.hbm [shape: bf16[64,256], index: 1, kind: input, shape index: {}]   ;;  %s3363_s2 = inlined_call_operand.hbm [shape: bf16[64,256], index: 2, kind: input, shape index: {}]   ;;  %s3364_s3 = inlined_call_operand.hbm [shape: bf16[64,256], index: 3, kind: input, shape index: {}]   ;;  %s3365_s4 = inlined_call_operand.hbm [shape: f32[16,256], index: 4, kind: output, shape index: {}]  }
   0x1   :  { %10 = vsyncpa [#allocation6], 0 }
   0x2   :  { %11 = vsyncpa [#allocation9], 0 }
   0x3   :  { %12 = vsyncpa [#allocation4], 0  ;;  %s2230_s15 = smov [#allocation5]   ;;  %s2112_s19 = scalar_lea.hbm %s3362_s1, 1024 }
   0x4   :  { %s28_s16 = sshll.u32 %s2230_s15, 4  ;;  %p2113_p0 = scmp.ne.s32.totalorder %s3362_s1, %s2112_s19  ;;  %s29_s16 = int_to_ptr.vmem [resolvable:$true] %s28_s16 }
   0x5   :  { %p2116_p1 = scmp.lt.u32.totalorder %s2112_s19, %s3362_s1 }
   0x7   :  { %p2118_p2 = pnand %p2116_p1, %p2113_p0 }
   0x9   :  { %2121 = shalt.err (!%p2118_p2)
}
   0xa   :  { %s2122_s24 = scalar_lea.vmem %s29_s16, 1024  ;;  %p2127_p4 = scmp.lt.s32.totalorder %s29_s16, %s29_s16 }
   0xb   :  { %p2123_p3 = scmp.ne.s32.totalorder %s29_s16, %s2122_s24  ;;  %p2128_p5 = scmp.lt.s32.totalorder %s2122_s24, %s2122_s24 }
   0xd   :  { %p2129_p6 = por %p2128_p5, %p2127_p4 }
   0xf   :  { %p2130_p7 = pnand %p2129_p6, %p2123_p3 }
  0x11   :  { %2133 = shalt.err (!%p2130_p7)
}
  0x12   :  { %s2231_s25 = smov 128   ;;  %s2232_s26 = smov 8  }
  0x13   :  { %34 = dma.hbm_to_vmem [thread:$0]  %s3362_s1, 1024, %s29_s16, [#allocation6], %s2231_s25, %s2231_s25, %s2232_s26  }
  0x14   :  { %s2233_s29 = smov [#allocation2]   ;;  %s2234_s5 = smov [#allocation7]  }
  0x15   :  { %s19_s30 = sshll.u32 %s2233_s29, 4  ;;  %s40_s6 = sshll.u32 %s2234_s5, 4  ;;  %s20_s30 = int_to_ptr.vmem [resolvable:$true] %s19_s30  ;;  %s41_s6 = int_to_ptr.vmem [resolvable:$true] %s40_s6 }
  0x16   :  { %s2134_s9 = scalar_lea.hbm %s3361_s0, 128 }
  0x17   :  { %p2135_p8 = scmp.ne.s32.totalorder %s3361_s0, %s2134_s9  ;;  %p2138_p9 = scmp.lt.u32.totalorder %s2134_s9, %s3361_s0 }
  0x19   :  { %p2140_p10 = pnand %p2138_p9, %p2135_p8 }
  0x1b   :  { %2143 = shalt.err (!%p2140_p10)
}
  0x1c   :  { %s2144_s1 = scalar_lea.vmem %s20_s30, 128  ;;  %p2149_p12 = scmp.lt.s32.totalorder %s20_s30, %s20_s30 }
  0x1d   :  { %p2145_p11 = scmp.ne.s32.totalorder %s20_s30, %s2144_s1  ;;  %p2150_p13 = scmp.lt.s32.totalorder %s2144_s1, %s2144_s1 }
  0x1f   :  { %p2151_p0 = por %p2150_p13, %p2149_p12 }
  0x21   :  { %p2152_p1 = pnand %p2151_p0, %p2145_p11 }
  0x23   :  { %2155 = shalt.err (!%p2152_p1)
}
  0x24   :  { %22 = dma.hbm_to_vmem [thread:$0]  %s3361_s0, 128, %s20_s30, [#allocation3]  }
  0x25   :  { %s2156_s18 = scalar_lea.hbm %s3363_s2, 1024 }
  0x26   :  { %p2157_p2 = scmp.ne.s32.totalorder %s3363_s2, %s2156_s18  ;;  %p2160_p3 = scmp.lt.u32.totalorder %s2156_s18, %s3363_s2 }
  0x28   :  { %p2162_p4 = pnand %p2160_p3, %p2157_p2 }
  0x2a   :  { %2165 = shalt.err (!%p2162_p4)
}
  0x2b   :  { %s2166_s23 = scalar_lea.vmem %s41_s6, 1024  ;;  %p2171_p6 = scmp.lt.s32.totalorder %s41_s6, %s41_s6 }
  0x2c   :  { %p2167_p5 = scmp.ne.s32.totalorder %s41_s6, %s2166_s23  ;;  %p2172_p7 = scmp.lt.s32.totalorder %s2166_s23, %s2166_s23 }
  0x2e   :  { %p2173_p8 = por %p2172_p7, %p2171_p6 }
  0x30   :  { %p2174_p9 = pnand %p2173_p8, %p2167_p5 }
  0x32   :  { %2177 = shalt.err (!%p2174_p9)
}
  0x33   :  { %46 = dma.hbm_to_vmem [thread:$0]  %s3363_s2, 1024, %s41_s6, [#allocation6], %s2231_s25, %s2231_s25, %s2232_s26  }
  0x34   :  { %s2235_s27 = smov [#allocation8]   ;;  %s2178_s5 = scalar_lea.hbm %s3364_s3, 1024 }
  0x35   :  { %s52_s28 = sshll.u32 %s2235_s27, 4  ;;  %p2179_p10 = scmp.ne.s32.totalorder %s3364_s3, %s2178_s5  ;;  %s53_s28 = int_to_ptr.vmem [resolvable:$true] %s52_s28 }
  0x36   :  { %p2182_p11 = scmp.lt.u32.totalorder %s2178_s5, %s3364_s3 }
  0x38   :  { %p2184_p12 = pnand %p2182_p11, %p2179_p10 }
  0x3a   :  { %2187 = shalt.err (!%p2184_p12)
}
  0x3b   :  { %s2188_s11 = scalar_lea.vmem %s53_s28, 1024  ;;  %p2193_p0 = scmp.lt.s32.totalorder %s53_s28, %s53_s28 }
  0x3c   :  { %p2189_p13 = scmp.ne.s32.totalorder %s53_s28, %s2188_s11  ;;  %p2194_p1 = scmp.lt.s32.totalorder %s2188_s11, %s2188_s11 }
  0x3e   :  { %p2195_p2 = por %p2194_p1, %p2193_p0 }
  0x40   :  { %p2196_p3 = pnand %p2195_p2, %p2189_p13 }
  0x42   :  { %2199 = shalt.err (!%p2196_p3)
}
  0x43   :  { %58 = dma.hbm_to_vmem [thread:$0]  %s3364_s3, 1024, %s53_s28, [#allocation9], %s2231_s25, %s2231_s25, %s2232_s26  }
  0x44   :  { %2222 = dma.done.wait [#allocation3], 128  }
  0x45   :  { %2223 = vsyncadd [#allocation3], 4294967168 }
  0x46   :  { %2224 = dma.done.wait [#allocation6], 2048  }
  0x47   :  { %2225 = vsyncadd [#allocation6], 4294965248 }
  0x48   :  { %2226 = dma.done.wait [#allocation9], 1024  }
  0x49   :  { %2227 = vsyncadd [#allocation9], 4294966272  ;;  %v74_v0 = vlaneseq  ;;  %v73_v11 = vld [vmem:[#allocation2] sm:$0x77]  ;;  %s2243_s3 = smov [#allocation10]  }
  0x4a   :  { %v2359_v18 = vadd.f32 1.0, %v73_v11  ;;  %s1954_s25 = sshll.u32 %s2243_s3, 4  ;;  %s1955_s25 = int_to_ptr.vmem [resolvable:$true] %s1954_s25 }
  0x4b   :  { %v2328_v1 = vshrl.u32 %v74_v0, 7  ;;  %s2200_s26 = scalar_lea.vmem %s1955_s25, 512  ;;  %p2205_p5 = scmp.lt.s32.totalorder %s1955_s25, %s1955_s25 }
  0x4c   :  { %3431 = vst [vmem:[#allocation20_spill] sm:$0xff] %v2359_v18  ;;  %v300_v26 = vmul.f32 7.5, %v2359_v18  ;;  %p2201_p4 = scmp.ne.s32.totalorder %s1955_s25, %s2200_s26  ;;  %p2206_p6 = scmp.lt.s32.totalorder %s2200_s26, %s2200_s26 }
  0x4d   :  { %v76_v2 = vadd.s32 8, %v2328_v1  ;;  %v107_v3 = vcvt.s32.f32 %v2328_v1  ;;  %v2333_v4 = vsub.s32 1, %v2328_v1  ;;  %v2336_v5 = vsub.s32 5, %v2328_v1 }
  0x4e   :  { %v2339_v6 = vsub.s32 2, %v2328_v1  ;;  %v2342_v9 = vadd.s32 16, %v2328_v1  ;;  %v2345_v10 = vadd.s32 24, %v2328_v1  ;;  %v2348_v12 = vsub.s32 6, %v2328_v1  ;;  %p2207_p7 = por %p2206_p6, %p2205_p5 }
  0x4f   :  { %3426 = vst [vmem:[#allocation15_spill] sm:$0xff] %v2333_v4  ;;  %3427 = vst [vmem:[#allocation16_spill] sm:$0xff] %v2336_v5  ;;  %v108_v7 = vcvt.s32.f32 %v76_v2  ;;  %v139_v8 = vadd.f32 0.5, %v107_v3  ;;  %v2351_v13 = vsub.s32 0, %v2328_v1  ;;  %v2354_v14 = vadd.s32 32, %v2328_v1 }
  0x50   :  { %3428 = vst [vmem:[#allocation17_spill] sm:$0xff] %v2339_v6  ;;  %3429 = vst [vmem:[#allocation18_spill] sm:$0xff] %v2348_v12  ;;  %v2357_v15 = vadd.s32 40, %v2328_v1  ;;  %v109_v19 = vcvt.s32.f32 %v2342_v9  ;;  %v2363_v20 = vsub.s32 4, %v2328_v1  ;;  %v110_v21 = vcvt.s32.f32 %v2345_v10  ;;  %p2208_p8 = pnand %p2207_p7, %p2201_p4 }
  0x51   :  { %3430 = vst [vmem:[#allocation19_spill] sm:$0xff] %v2351_v13  ;;  %v140_v16 = vadd.f32 0.5, %v108_v7  ;;  %v171_v17 = vmul.f32 0.0625, %v139_v8  ;;  %v111_v22 = vcvt.s32.f32 %v2354_v14  ;;  %v2368_v23 = vadd.s32 48, %v2328_v1 }
  0x52   :  { %3432 = vst [vmem:[#allocation21_spill] sm:$0xff] %v2363_v20  ;;  %v2372_v27 = vadd.s32 56, %v2328_v1  ;;  %v141_v28 = vadd.f32 0.5, %v109_v19  ;;  %v142_v29 = vadd.f32 0.5, %v110_v21  ;;  %v112_v30 = vcvt.s32.f32 %v2357_v15 }
  0x53   :  { %v172_v24 = vmul.f32 0.0625, %v140_v16  ;;  %v203_v25 = vfloor.f32 %v171_v17  ;;  %v2381_v31 = vadd.f32 0.5, %v111_v22  ;;  %v309_v34 = vrot.slane %v300_v26, %v2336_v5 }
  0x54   :  { %v423_v35 = vrot.slane %v300_v26, %v2348_v12  ;;  %v1136_v36 = vrot.slane %v300_v26, %v2351_v13  ;;  %v1140_v37 = vrot.slane %v300_v26, %v2363_v20  ;;  %v305_v38 = vrot.slane %v300_v26, %v2333_v4 }
  0x55   :  { %v204_v32 = vfloor.f32 %v172_v24  ;;  %v235_v33 = vmul.f32 16.0, %v203_v25  ;;  %v419_v39 = vrot.slane %v300_v26, %v2339_v6  ;;  %v2392_v42 = vrot.slane %v309_v34, %v2333_v4 }
  0x56   :  { %v2395_v43 = vrot.slane %v423_v35, %v2339_v6  ;;  %v2398_v44 = vrot.slane %v1136_v36, %v2351_v13  ;;  %v2401_v45 = vrot.slane %v1140_v37, %v2351_v13  ;;  %v2404_v46 = vrot.slane %v305_v38, %v2333_v4 }
  0x57   :  { %v236_v40 = vmul.f32 16.0, %v204_v32  ;;  %v2389_v41 = vsub.f32 %v107_v3, %v235_v33  ;;  %v2407_v47 = vrot.slane %v419_v39, %v2339_v6  ;;  %v321_v49 = vsub.f32 %v203_v25, %v2392_v42 }
  0x58   :  { %v323_v50 = vsub.f32 %v204_v32, %v2392_v42  ;;  %v1152_v52 = vsub.f32 %v203_v25, %v2401_v45  ;;  %v1154_v53 = vsub.f32 %v204_v32, %v2401_v45  ;;  %v320_v54 = vsub.f32 %v203_v25, %v2404_v46 }
  0x59   :  { %v2409_v48 = vsub.f32 %v108_v7, %v236_v40  ;;  %v435_v51 = vsub.f32 %v2389_v41, %v2395_v43  ;;  %v322_v55 = vsub.f32 %v204_v32, %v2404_v46  ;;  %v434_v58 = vsub.f32 %v2389_v41, %v2407_v47 }
  0x5a   :  { %v385_v56 = vpack.c.bf16 %v323_v50, %v321_v49  ;;  %v1216_v60 = vpack.c.bf16 %v1154_v53, %v1152_v52  ;;  %v1544_v62 = vsub.f32 %v2389_v41, %v2398_v44  ;;  %v1151_v7 = vsub.f32 %v203_v25, %v2398_v44 }
  0x5b   :  { %v437_v57 = vsub.f32 %v2409_v48, %v2395_v43  ;;  %v436_v59 = vsub.f32 %v2409_v48, %v2407_v47  ;;  %v384_v61 = vpack.c.bf16 %v322_v55, %v320_v54  ;;  %v1546_v63 = vsub.f32 %v2409_v48, %v2398_v44 }
  0x5c   :  { %v531_v2 = vand.u32 2147450879, %v385_v56  ;;  %v1248_v8 = vand.u32 2147450879, %v1216_v60  ;;  %v1153_v17 = vsub.f32 %v204_v32, %v2398_v44  ;;  %v113_v34 = vcvt.s32.f32 %v2368_v23 }
  0x5d   :  { %v499_v0 = vpack.c.bf16 %v437_v57, %v435_v51  ;;  %v498_v3 = vpack.c.bf16 %v436_v59, %v434_v58  ;;  %v530_v11 = vand.u32 2147450879, %v384_v61  ;;  %v1608_v16 = vpack.c.bf16 %v1546_v63, %v1544_v62 }
  0x5e   :  { %v563_v24 = vsub.bf16 1065369472, %v531_v2  ;;  %v1280_v35 = vsub.bf16 1065369472, %v1248_v8  ;;  %v1215_v38 = vpack.c.bf16 %v1153_v17, %v1151_v7  ;;  %v3366_v39 = vmov 0  }
  0x5f   :  { %v627_v26 = vand.u32 2147450879, %v499_v0  ;;  %v626_v33 = vand.u32 2147450879, %v498_v3  ;;  %v562_v36 = vsub.bf16 1065369472, %v530_v11  ;;  %v114_v60 = vcvt.s32.f32 %v2372_v27 }
  0x60   :  { %v1640_v37 = vand.u32 2147450879, %v1608_v16  ;;  %v2433_v40 = vmax.bf16 %v3366_v39, %v563_v24  ;;  %v173_v50 = vmul.f32 0.0625, %v141_v28  ;;  %v1312_v51 = vmax.bf16 %v3366_v39, %v1280_v35 }
  0x61   :  { %v659_v49 = vsub.bf16 1065369472, %v627_v26  ;;  %v658_v25 = vsub.bf16 1065369472, %v626_v33  ;;  %v2437_v32 = vmax.bf16 %v3366_v39, %v562_v36  ;;  %v1247_v52 = vand.u32 2147450879, %v1215_v38 }
  0x62   :  { %v144_v53 = vadd.f32 0.5, %v112_v30  ;;  %v174_v56 = vmul.f32 0.0625, %v142_v29  ;;  %v205_v57 = vfloor.f32 %v173_v50  ;;  %v2443_v58 = vsub.bf16 1065369472, %v1640_v37 }
  0x63   :  { %v691_v54 = vmax.bf16 %v3366_v39, %v659_v49  ;;  %v690_v55 = vmax.bf16 %v3366_v39, %v658_v25  ;;  %v1279_v59 = vsub.bf16 1065369472, %v1247_v52  ;;  %v175_v28 = vmul.f32 0.0625, %v2381_v31 }
  0x64   :  { %v206_v0 = vfloor.f32 %v174_v56  ;;  %v237_v3 = vmul.f32 16.0, %v205_v57  ;;  %v325_v7 = vsub.f32 %v205_v57, %v2392_v42  ;;  %v176_v29 = vmul.f32 0.0625, %v144_v53 }
  0x65   :  { %v723_v61 = vmul.bf16 %v691_v54, %v2433_v40  ;;  %v1344_v62 = vmul.bf16 %v1312_v51, %v691_v54  ;;  %v722_v63 = vmul.bf16 %v690_v55, %v2437_v32  ;;  %v1311_v2 = vmax.bf16 %v3366_v39, %v1279_v59 }
  0x66   :  { %v238_v8 = vmul.f32 16.0, %v206_v0  ;;  %v327_v11 = vsub.f32 %v206_v0, %v2392_v42  ;;  %v1156_v31 = vsub.f32 %v205_v57, %v2401_v45  ;;  %v1158_v16 = vsub.f32 %v206_v0, %v2401_v45 }
  0x67   :  { %802 = vmatprep.subr.bf16.mxu1 %v723_v61  ;;  %1423 = vmatprep.subr.bf16.mxu0 %v1344_v62  ;;  %v1343_v17 = vmul.bf16 %v1311_v2, %v690_v55  ;;  %v2456_v24 = vsub.f32 %v109_v19, %v237_v3  ;;  %v324_v26 = vsub.f32 %v205_v57, %v2404_v46  ;;  %v207_v54 = vfloor.f32 %v175_v28 }
  0x68   :  { %803 = vmatpush1.bf16.msra.mxu1 %v722_v63  ;;  %v326_v33 = vsub.f32 %v206_v0, %v2404_v46  ;;  %v2462_v35 = vsub.f32 %v110_v21, %v238_v8  ;;  %v387_v36 = vpack.c.bf16 %v327_v11, %v325_v7  ;;  %v1218_v37 = vpack.c.bf16 %v1158_v16, %v1156_v31 }
  0x69   :  { %v1155_v38 = vsub.f32 %v205_v57, %v2398_v44  ;;  %1424 = vmatpush1.bf16.msra.mxu0 %v1343_v17  ;;  %v439_v49 = vsub.f32 %v2456_v24, %v2395_v43  ;;  %v438_v9 = vsub.f32 %v2456_v24, %v2407_v47  ;;  %v1157_v19 = vsub.f32 %v206_v0, %v2398_v44 }
  0x6a   :  { %v386_v25 = vpack.c.bf16 %v326_v33, %v324_v26  ;;  %v441_v50 = vsub.f32 %v2462_v35, %v2395_v43  ;;  %v533_v10 = vand.u32 2147450879, %v387_v36  ;;  %v1250_v21 = vand.u32 2147450879, %v1218_v37 }
  0x6b   :  { %v440_v51 = vsub.f32 %v2462_v35, %v2407_v47  ;;  %v1217_v53 = vpack.c.bf16 %v1157_v19, %v1155_v38  ;;  %v208_v55 = vfloor.f32 %v176_v29  ;;  %v239_v2 = vmul.f32 16.0, %v207_v54 }
  0x6c   :  { %v532_v52 = vand.u32 2147450879, %v386_v25  ;;  %v501_v56 = vpack.c.bf16 %v441_v50, %v439_v49  ;;  %v565_v57 = vsub.bf16 1065369472, %v533_v10  ;;  %v1282_v59 = vsub.bf16 1065369472, %v1250_v21 }
  0x6d   :  { %v500_v61 = vpack.c.bf16 %v440_v51, %v438_v9  ;;  %v1249_v63 = vand.u32 2147450879, %v1217_v53  ;;  %v240_v0 = vmul.f32 16.0, %v208_v55  ;;  %v2483_v29 = vsub.f32 %v111_v22, %v239_v2 }
  0x6e   :  { %v564_v62 = vsub.bf16 1065369472, %v532_v52  ;;  %v2475_v3 = vmax.bf16 %v3366_v39, %v565_v57  ;;  %v629_v7 = vand.u32 2147450879, %v501_v56  ;;  %v1314_v8 = vmax.bf16 %v3366_v39, %v1282_v59 }
  0x6f   :  { %v628_v11 = vand.u32 2147450879, %v500_v61  ;;  %v1281_v28 = vsub.bf16 1065369472, %v1249_v63  ;;  %v2487_v16 = vsub.f32 %v112_v30, %v240_v0  ;;  %v329_v33 = vsub.f32 %v207_v54, %v2392_v42 }
  0x70   :  { %v2479_v31 = vmax.bf16 %v3366_v39, %v564_v62  ;;  %v661_v17 = vsub.bf16 1065369472, %v629_v7  ;;  %v331_v36 = vsub.f32 %v208_v55, %v2392_v42  ;;  %v443_v38 = vsub.f32 %v2483_v29, %v2395_v43 }
  0x71   :  { %v660_v26 = vsub.bf16 1065369472, %v628_v11  ;;  %v1313_v37 = vmax.bf16 %v3366_v39, %v1281_v28  ;;  %v445_v14 = vsub.f32 %v2487_v16, %v2395_v43  ;;  %v1160_v22 = vsub.f32 %v207_v54, %v2401_v45 }
  0x72   :  { %v693_v15 = vmax.bf16 %v3366_v39, %v661_v17  ;;  %v389_v49 = vpack.c.bf16 %v331_v36, %v329_v33  ;;  %v1162_v25 = vsub.f32 %v208_v55, %v2401_v45  ;;  %v328_v19 = vsub.f32 %v207_v54, %v2404_v46 }
  0x73   :  { %v692_v30 = vmax.bf16 %v3366_v39, %v660_v26  ;;  %v503_v9 = vpack.c.bf16 %v445_v14, %v443_v38  ;;  %v330_v50 = vsub.f32 %v208_v55, %v2404_v46  ;;  %v442_v10 = vsub.f32 %v2483_v29, %v2407_v47 }
  0x74   :  { %v725_v21 = vmul.bf16 %v693_v15, %v2475_v3  ;;  %v1346_v51 = vmul.bf16 %v1314_v8, %v693_v15  ;;  %v535_v56 = vand.u32 2147450879, %v389_v49  ;;  %v1220_v59 = vpack.c.bf16 %v1162_v25, %v1160_v22 }
  0x75   :  { %v724_v52 = vmul.bf16 %v692_v30, %v2479_v31  ;;  %v1345_v53 = vmul.bf16 %v1313_v37, %v692_v30  ;;  %v631_v57 = vand.u32 2147450879, %v503_v9  ;;  %v388_v61 = vpack.c.bf16 %v330_v50, %v328_v19 }
  0x76   :  { %804 = vmatprep.subr.bf16.mxu1 %v725_v21  ;;  %1425 = vmatprep.subr.bf16.mxu0 %v1346_v51  ;;  %v444_v62 = vsub.f32 %v2487_v16, %v2407_v47  ;;  %v1159_v63 = vsub.f32 %v207_v54, %v2398_v44  ;;  %v1161_v2 = vsub.f32 %v208_v55, %v2398_v44  ;;  %v145_v0 = vadd.f32 0.5, %v113_v34 }
  0x77   :  { %805 = vmatpush1.bf16.msra.mxu1 %v724_v52  ;;  %1426 = vmatpush1.bf16.msra.mxu0 %v1345_v53  ;;  %v567_v7 = vsub.bf16 1065369472, %v535_v56  ;;  %v663_v8 = vsub.bf16 1065369472, %v631_v57  ;;  %v1252_v11 = vand.u32 2147450879, %v1220_v59  ;;  %v2520_v38 = vmax.bf16 %v3366_v39, %v2443_v58 }
  0x78   :  { %v502_v28 = vpack.c.bf16 %v444_v62, %v442_v10  ;;  %v534_v17 = vand.u32 2147450879, %v388_v61  ;;  %v1219_v26 = vpack.c.bf16 %v1161_v2, %v1159_v63  ;;  %v146_v33 = vadd.f32 0.5, %v114_v60 }
  0x79   :  { %v2515_v36 = vmax.bf16 %v3366_v39, %v567_v7  ;;  %v695_v54 = vmax.bf16 %v3366_v39, %v663_v8  ;;  %v1284_v55 = vsub.bf16 1065369472, %v1252_v11  ;;  %v177_v37 = vmul.f32 0.0625, %v145_v0 }
  0x7a   :  { %v566_v14 = vsub.bf16 1065369472, %v534_v17  ;;  %v630_v22 = vand.u32 2147450879, %v502_v28  ;;  %v1251_v15 = vand.u32 2147450879, %v1219_v26 }
  0x7b   :  { %v727_v30 = vmul.bf16 %v695_v54, %v2515_v36  ;;  %v1316_v49 = vmax.bf16 %v3366_v39, %v1284_v55  ;;  %v178_v25 = vmul.f32 0.0625, %v146_v33  ;;  %v209_v9 = vfloor.f32 %v177_v37 }
  0x7c   :  { %v2525_v19 = vmax.bf16 %v3366_v39, %v566_v14  ;;  %v662_v50 = vsub.bf16 1065369472, %v630_v22  ;;  %v1283_v10 = vsub.bf16 1065369472, %v1251_v15  ;;  %v2528_v21 = vadd.s32 64, %v2328_v1 }
  0x7d   :  { %806 = vmatprep.subr.bf16.mxu1 %v727_v30  ;;  %v1348_v58 = vmul.bf16 %v1316_v49, %v695_v54  ;;  %v210_v51 = vfloor.f32 %v178_v25  ;;  %v241_v52 = vmul.f32 16.0, %v209_v9  ;;  %v333_v53 = vsub.f32 %v209_v9, %v2392_v42 }
  0x7e   :  { %v694_v56 = vmax.bf16 %v3366_v39, %v662_v50  ;;  %v1315_v57 = vmax.bf16 %v3366_v39, %v1283_v10  ;;  %v1164_v59 = vsub.f32 %v209_v9, %v2401_v45  ;;  %v332_v61 = vsub.f32 %v209_v9, %v2404_v46 }
  0x7f   :  { %1427 = vmatprep.subr.bf16.mxu0 %v1348_v58  ;;  %v242_v62 = vmul.f32 16.0, %v210_v51  ;;  %v2537_v63 = vsub.f32 %v113_v34, %v241_v52  ;;  %v335_v2 = vsub.f32 %v210_v51, %v2392_v42  ;;  %v1166_v0 = vsub.f32 %v210_v51, %v2401_v45 }
  0x80   :  { %v726_v7 = vmul.bf16 %v694_v56, %v2525_v19  ;;  %v1347_v8 = vmul.bf16 %v1315_v57, %v694_v56  ;;  %v334_v11 = vsub.f32 %v210_v51, %v2404_v46  ;;  %v1163_v28 = vsub.f32 %v209_v9, %v2398_v44 }
  0x81   :  { %v2546_v17 = vsub.f32 %v114_v60, %v242_v62  ;;  %v391_v26 = vpack.c.bf16 %v335_v2, %v333_v53  ;;  %v447_v23 = vsub.f32 %v2537_v63, %v2395_v43  ;;  %v1222_v34 = vpack.c.bf16 %v1166_v0, %v1164_v59 }
  0x82   :  { %807 = vmatpush1.bf16.msra.mxu1 %v726_v7  ;;  %1428 = vmatpush1.bf16.msra.mxu0 %v1347_v8  ;;  %v390_v33 = vpack.c.bf16 %v334_v11, %v332_v61  ;;  %v446_v54 = vsub.f32 %v2537_v63, %v2407_v47  ;;  %v1165_v55 = vsub.f32 %v210_v51, %v2398_v44  ;;  %v84_v37 = vadd.s32 72, %v2328_v1 }
  0x83   :  { %v449_v27 = vsub.f32 %v2546_v17, %v2395_v43  ;;  %v537_v60 = vand.u32 2147450879, %v391_v26  ;;  %v1254_v14 = vand.u32 2147450879, %v1222_v34  ;;  %v448_v22 = vsub.f32 %v2546_v17, %v2407_v47 }
  0x84   :  { %v536_v15 = vand.u32 2147450879, %v390_v33  ;;  %v1221_v30 = vpack.c.bf16 %v1165_v55, %v1163_v28  ;;  %v115_v49 = vcvt.s32.f32 %v2528_v21  ;;  %v116_v25 = vcvt.s32.f32 %v84_v37 }
  0x85   :  { %v505_v9 = vpack.c.bf16 %v449_v27, %v447_v23  ;;  %v569_v50 = vsub.bf16 1065369472, %v537_v60  ;;  %v1286_v10 = vsub.bf16 1065369472, %v1254_v14  ;;  %v504_v58 = vpack.c.bf16 %v448_v22, %v446_v54 }
  0x86   :  { %v568_v51 = vsub.bf16 1065369472, %v536_v15  ;;  %v1253_v52 = vand.u32 2147450879, %v1221_v30  ;;  %v147_v53 = vadd.f32 0.5, %v115_v49  ;;  %v148_v56 = vadd.f32 0.5, %v116_v25 }
  0x87   :  { %v2560_v57 = vmax.bf16 %v3366_v39, %v569_v50  ;;  %v633_v59 = vand.u32 2147450879, %v505_v9  ;;  %v1318_v61 = vmax.bf16 %v3366_v39, %v1286_v10  ;;  %v632_v62 = vand.u32 2147450879, %v504_v58 }
  0x88   :  { %v2564_v2 = vmax.bf16 %v3366_v39, %v568_v51  ;;  %v1285_v21 = vsub.bf16 1065369472, %v1253_v52  ;;  %v179_v0 = vmul.f32 0.0625, %v147_v53  ;;  %v180_v7 = vmul.f32 0.0625, %v148_v56 }
  0x89   :  { %v665_v8 = vsub.bf16 1065369472, %v633_v59  ;;  %v664_v11 = vsub.bf16 1065369472, %v632_v62  ;;  %v2567_v28 = vadd.s32 80, %v2328_v1  ;;  %v2570_v26 = vadd.s32 88, %v2328_v1 }
  0x8a   :  { %v1317_v23 = vmax.bf16 %v3366_v39, %v1285_v21  ;;  %v211_v34 = vfloor.f32 %v179_v0  ;;  %v212_v33 = vfloor.f32 %v180_v7  ;;  %v2574_v54 = vadd.s32 96, %v2328_v1 }
  0x8b   :  { %v697_v55 = vmax.bf16 %v3366_v39, %v665_v8  ;;  %v696_v37 = vmax.bf16 %v3366_v39, %v664_v11  ;;  %v117_v27 = vcvt.s32.f32 %v2567_v28  ;;  %v118_v60 = vcvt.s32.f32 %v2570_v26 }
  0x8c   :  { %v243_v14 = vmul.f32 16.0, %v211_v34  ;;  %v244_v22 = vmul.f32 16.0, %v212_v33  ;;  %v337_v15 = vsub.f32 %v211_v34, %v2392_v42  ;;  %v339_v30 = vsub.f32 %v212_v33, %v2392_v42 }
  0x8d   :  { %v729_v9 = vmul.bf16 %v697_v55, %v2560_v57  ;;  %v1350_v50 = vmul.bf16 %v1318_v61, %v697_v55  ;;  %v728_v10 = vmul.bf16 %v696_v37, %v2564_v2  ;;  %v1349_v58 = vmul.bf16 %v1317_v23, %v696_v37 }
  0x8e   :  { %v2584_v51 = vsub.f32 %v115_v49, %v243_v14  ;;  %v2586_v52 = vsub.f32 %v116_v25, %v244_v22  ;;  %v393_v53 = vpack.c.bf16 %v339_v30, %v337_v15  ;;  %v1168_v56 = vsub.f32 %v211_v34, %v2401_v45 }
  0x8f   :  { %808 = vmatprep.subr.bf16.mxu1 %v729_v9  ;;  %1429 = vmatprep.subr.bf16.mxu0 %v1350_v50  ;;  %v1170_v59 = vsub.f32 %v212_v33, %v2401_v45  ;;  %v336_v62 = vsub.f32 %v211_v34, %v2404_v46  ;;  %v338_v21 = vsub.f32 %v212_v33, %v2404_v46  ;;  %v149_v0 = vadd.f32 0.5, %v117_v27 }
  0x90   :  { %809 = vmatpush1.bf16.msra.mxu1 %v728_v10  ;;  %1430 = vmatpush1.bf16.msra.mxu0 %v1349_v58  ;;  %v451_v49 = vsub.f32 %v2584_v51, %v2395_v43  ;;  %v453_v25 = vsub.f32 %v2586_v52, %v2395_v43  ;;  %v539_v61 = vand.u32 2147450879, %v393_v53  ;;  %v450_v7 = vsub.f32 %v2584_v51, %v2407_v47 }
  0x91   :  { %v1224_v8 = vpack.c.bf16 %v1170_v59, %v1168_v56  ;;  %v392_v11 = vpack.c.bf16 %v338_v21, %v336_v62  ;;  %v452_v28 = vsub.f32 %v2586_v52, %v2407_v47  ;;  %v1167_v23 = vsub.f32 %v211_v34, %v2398_v44 }
  0x92   :  { %v507_v55 = vpack.c.bf16 %v453_v25, %v451_v49  ;;  %v571_v37 = vsub.bf16 1065369472, %v539_v61  ;;  %v1169_v14 = vsub.f32 %v212_v33, %v2398_v44  ;;  %v150_v22 = vadd.f32 0.5, %v118_v60 }
  0x93   :  { %v1256_v15 = vand.u32 2147450879, %v1224_v8  ;;  %v506_v30 = vpack.c.bf16 %v452_v28, %v450_v7  ;;  %v538_v9 = vand.u32 2147450879, %v392_v11  ;;  %v181_v50 = vmul.f32 0.0625, %v149_v0 }
  0x94   :  { %v2605_v10 = vmax.bf16 %v3366_v39, %v571_v37  ;;  %v635_v58 = vand.u32 2147450879, %v507_v55  ;;  %v1223_v53 = vpack.c.bf16 %v1169_v14, %v1167_v23  ;;  %v182_v56 = vmul.f32 0.0625, %v150_v22 }
  0x95   :  { %v1288_v59 = vsub.bf16 1065369472, %v1256_v15  ;;  %v570_v62 = vsub.bf16 1065369472, %v538_v9  ;;  %v634_v34 = vand.u32 2147450879, %v506_v30  ;;  %v213_v21 = vfloor.f32 %v181_v50 }
  0x96   :  { %v667_v49 = vsub.bf16 1065369472, %v635_v58  ;;  %v1255_v25 = vand.u32 2147450879, %v1223_v53  ;;  %v214_v33 = vfloor.f32 %v182_v56  ;;  %v2608_v61 = vadd.s32 104, %v2328_v1 }
  0x97   :  { %v1320_v7 = vmax.bf16 %v3366_v39, %v1288_v59  ;;  %v2612_v0 = vmax.bf16 %v3366_v39, %v570_v62  ;;  %v666_v8 = vsub.bf16 1065369472, %v634_v34  ;;  %v245_v11 = vmul.f32 16.0, %v213_v21 }
  0x98   :  { %v699_v28 = vmax.bf16 %v3366_v39, %v667_v49  ;;  %v1287_v23 = vsub.bf16 1065369472, %v1255_v25  ;;  %v246_v55 = vmul.f32 16.0, %v214_v33  ;;  %v341_v37 = vsub.f32 %v213_v21, %v2392_v42 }
  0x99   :  { %v698_v14 = vmax.bf16 %v3366_v39, %v666_v8  ;;  %v2617_v22 = vsub.f32 %v117_v27, %v245_v11  ;;  %v343_v15 = vsub.f32 %v214_v33, %v2392_v42  ;;  %v1172_v30 = vsub.f32 %v213_v21, %v2401_v45 }
  0x9a   :  { %v731_v9 = vmul.bf16 %v699_v28, %v2605_v10  ;;  %v1352_v50 = vmul.bf16 %v1320_v7, %v699_v28  ;;  %v1319_v58 = vmax.bf16 %v3366_v39, %v1287_v23  ;;  %v2625_v53 = vsub.f32 %v118_v60, %v246_v55 }
  0x9b   :  { %v730_v56 = vmul.bf16 %v698_v14, %v2612_v0  ;;  %v395_v59 = vpack.c.bf16 %v343_v15, %v341_v37  ;;  %v455_v27 = vsub.f32 %v2617_v22, %v2395_v43  ;;  %v1174_v62 = vsub.f32 %v214_v33, %v2401_v45 }
  0x9c   :  { %810 = vmatprep.subr.bf16.mxu1 %v731_v9  ;;  %1431 = vmatprep.subr.bf16.mxu0 %v1352_v50  ;;  %v1351_v34 = vmul.bf16 %v1319_v58, %v698_v14  ;;  %v457_v49 = vsub.f32 %v2625_v53, %v2395_v43  ;;  %v340_v25 = vsub.f32 %v213_v21, %v2404_v46  ;;  %v119_v26 = vcvt.s32.f32 %v2574_v54 }
  0x9d   :  { %811 = vmatpush1.bf16.msra.mxu1 %v730_v56  ;;  %v541_v60 = vand.u32 2147450879, %v395_v59  ;;  %v1226_v7 = vpack.c.bf16 %v1174_v62, %v1172_v30  ;;  %v342_v8 = vsub.f32 %v214_v33, %v2404_v46  ;;  %v454_v11 = vsub.f32 %v2617_v22, %v2407_v47 }
  0x9e   :  { %1432 = vmatpush1.bf16.msra.mxu0 %v1351_v34  ;;  %v509_v28 = vpack.c.bf16 %v457_v49, %v455_v27  ;;  %v456_v23 = vsub.f32 %v2625_v53, %v2407_v47  ;;  %v1171_v55 = vsub.f32 %v213_v21, %v2398_v44  ;;  %v1173_v37 = vsub.f32 %v214_v33, %v2398_v44 }
  0x9f   :  { %v573_v14 = vsub.bf16 1065369472, %v541_v60  ;;  %v1258_v15 = vand.u32 2147450879, %v1226_v7  ;;  %v394_v54 = vpack.c.bf16 %v342_v8, %v340_v25  ;;  %v120_v9 = vcvt.s32.f32 %v2608_v61 }
  0xa0   :  { %v637_v30 = vand.u32 2147450879, %v509_v28  ;;  %v508_v50 = vpack.c.bf16 %v456_v23, %v454_v11  ;;  %v1225_v58 = vpack.c.bf16 %v1173_v37, %v1171_v55  ;;  %v151_v56 = vadd.f32 0.5, %v119_v26 }
  0xa1   :  { %v2645_v59 = vmul.bf16 %v2520_v38, %v2437_v32  ;;  %v1290_v27 = vsub.bf16 1065369472, %v1258_v15  ;;  %v540_v62 = vand.u32 2147450879, %v394_v54  ;;  %v152_v34 = vadd.f32 0.5, %v120_v9 }
  0xa2   :  { %v2648_v21 = vmax.bf16 %v3366_v39, %v573_v14  ;;  %v669_v33 = vsub.bf16 1065369472, %v637_v30  ;;  %v636_v49 = vand.u32 2147450879, %v508_v50  ;;  %v1257_v60 = vand.u32 2147450879, %v1225_v58 }
  0xa3   :  { %v1322_v25 = vmax.bf16 %v3366_v39, %v1290_v27  ;;  %v572_v61 = vsub.bf16 1065369472, %v540_v62  ;;  %v183_v7 = vmul.f32 0.0625, %v151_v56  ;;  %v184_v8 = vmul.f32 0.0625, %v152_v34 }
  0xa4   :  { %3433 = vst [vmem:[#allocation22_spill] sm:$0xff] %v2648_v21  ;;  %v701_v11 = vmax.bf16 %v3366_v39, %v669_v33  ;;  %v668_v28 = vsub.bf16 1065369472, %v636_v49  ;;  %v1289_v23 = vsub.bf16 1065369472, %v1257_v60  ;;  %v2653_v32 = vadd.s32 112, %v2328_v1 }
  0xa5   :  { %v2656_v38 = vmax.bf16 %v3366_v39, %v572_v61  ;;  %v215_v55 = vfloor.f32 %v183_v7  ;;  %v216_v37 = vfloor.f32 %v184_v8  ;;  %v2659_v14 = vadd.s32 120, %v2328_v1 }
  0xa6   :  { %v733_v15 = vmul.bf16 %v701_v11, %v2648_v21  ;;  %v1354_v54 = vmul.bf16 %v1322_v25, %v701_v11  ;;  %v700_v30 = vmax.bf16 %v3366_v39, %v668_v28  ;;  %v1321_v50 = vmax.bf16 %v3366_v39, %v1289_v23 }
  0xa7   :  { %3434 = vst [vmem:[#allocation23_spill] sm:$0xff] %v2656_v38  ;;  %v247_v58 = vmul.f32 16.0, %v215_v55  ;;  %v248_v56 = vmul.f32 16.0, %v216_v37  ;;  %v345_v27 = vsub.f32 %v215_v55, %v2392_v42  ;;  %v347_v62 = vsub.f32 %v216_v37, %v2392_v42 }
  0xa8   :  { %812 = vmatprep.subr.bf16.mxu1 %v733_v15  ;;  %1433 = vmatprep.subr.bf16.mxu0 %v1354_v54  ;;  %v732_v34 = vmul.bf16 %v700_v30, %v2656_v38  ;;  %v1353_v33 = vmul.bf16 %v1321_v50, %v700_v30  ;;  %v1176_v49 = vsub.f32 %v215_v55, %v2401_v45  ;;  %v121_v60 = vcvt.s32.f32 %v2653_v32 }
  0xa9   :  { %v2669_v25 = vsub.f32 %v119_v26, %v247_v58  ;;  %v2671_v61 = vsub.f32 %v120_v9, %v248_v56  ;;  %v397_v7 = vpack.c.bf16 %v347_v62, %v345_v27  ;;  %v1178_v8 = vsub.f32 %v216_v37, %v2401_v45 }
  0xaa   :  { %813 = vmatpush1.bf16.msra.mxu1 %v732_v34  ;;  %1434 = vmatpush1.bf16.msra.mxu0 %v1353_v33  ;;  %v344_v11 = vsub.f32 %v215_v55, %v2404_v46  ;;  %v346_v28 = vsub.f32 %v216_v37, %v2404_v46  ;;  %v1175_v23 = vsub.f32 %v215_v55, %v2398_v44  ;;  %v122_v15 = vcvt.s32.f32 %v2659_v14 }
  0xab   :  { %v459_v32 = vsub.f32 %v2669_v25, %v2395_v43  ;;  %v461_v26 = vsub.f32 %v2671_v61, %v2395_v43  ;;  %v543_v9 = vand.u32 2147450879, %v397_v7  ;;  %v1228_v54 = vpack.c.bf16 %v1178_v8, %v1176_v49 }
  0xac   :  { %v396_v30 = vpack.c.bf16 %v346_v28, %v344_v11  ;;  %v458_v50 = vsub.f32 %v2669_v25, %v2407_v47  ;;  %v460_v58 = vsub.f32 %v2671_v61, %v2407_v47  ;;  %v1177_v56 = vsub.f32 %v216_v37, %v2398_v44 }
  0xad   :  { %v511_v55 = vpack.c.bf16 %v461_v26, %v459_v32  ;;  %v575_v27 = vsub.bf16 1065369472, %v543_v9  ;;  %v1260_v14 = vand.u32 2147450879, %v1228_v54  ;;  %v153_v62 = vadd.f32 0.5, %v121_v60 }
  0xae   :  { %v510_v34 = vpack.c.bf16 %v460_v58, %v458_v50  ;;  %v542_v33 = vand.u32 2147450879, %v396_v30  ;;  %v1227_v39 = vpack.c.bf16 %v1177_v56, %v1175_v23  ;;  %v154_v12 = vadd.f32 0.5, %v122_v15 }
  0xaf   :  { %v3435_v6 = vmov 0   ;;  %v639_v49 = vand.u32 2147450879, %v511_v55  ;;  %v1292_v8 = vsub.bf16 1065369472, %v1260_v14  ;;  %v185_v11 = vmul.f32 0.0625, %v153_v62 }
  0xb0   :  { %v2688_v7 = vmax.bf16 %v3435_v6, %v575_v27  ;;  %v574_v28 = vsub.bf16 1065369472, %v542_v33  ;;  %v638_v5 = vand.u32 2147450879, %v510_v34  ;;  %v1259_v20 = vand.u32 2147450879, %v1227_v39 }
  0xb1   :  { %v671_v32 = vsub.bf16 1065369472, %v639_v49  ;;  %v1324_v26 = vmax.bf16 %v3435_v6, %v1292_v8  ;;  %v186_v9 = vmul.f32 0.0625, %v154_v12  ;;  %v217_v54 = vfloor.f32 %v185_v11  ;;  %v2074_v14 = vld [vmem:[#allocation5 + $0x4] ss:$8 sps:$4 sm:$0xff]  }
  0xb2   :  { %3436 = vst [vmem:[#allocation24_spill] sm:$0xff] %v2688_v7  ;;  %v2694_v23 = vmax.bf16 %v3435_v6, %v574_v28  ;;  %v670_v30 = vsub.bf16 1065369472, %v638_v5  ;;  %v1291_v50 = vsub.bf16 1065369472, %v1259_v20  ;;  %v2697_v58 = vadd.s32 128, %v2328_v1  ;;  %834 = vmatprep.mubr.bf16.mxu1 %v2074_v14 }
  0xb3   :  { %v703_v56 = vmax.bf16 %v3435_v6, %v671_v32  ;;  %v218_v55 = vfloor.f32 %v186_v9  ;;  %v249_v39 = vmul.f32 16.0, %v217_v54  ;;  %v349_v27 = vsub.f32 %v217_v54, %v2392_v42  ;;  %v2077_v5 = vld [vmem:[#allocation7 + $0x4] ss:$8 sps:$4 sm:$0xff]  }
  0xb4   :  { %3437 = vst [vmem:[#allocation25_spill] sm:$0xff] %v2694_v23  ;;  %v702_v62 = vmax.bf16 %v3435_v6, %v670_v30  ;;  %v1323_v12 = vmax.bf16 %v3435_v6, %v1291_v50  ;;  %v1180_v34 = vsub.f32 %v217_v54, %v2401_v45  ;;  %v348_v33 = vsub.f32 %v217_v54, %v2404_v46 }
  0xb5   :  { %v735_v20 = vmul.bf16 %v703_v56, %v2688_v7  ;;  %v1356_v49 = vmul.bf16 %v1324_v26, %v703_v56  ;;  %v250_v8 = vmul.f32 16.0, %v218_v55  ;;  %v2706_v11 = vsub.f32 %v121_v60, %v249_v39  ;;  %1455 = vmatprep.mubr.bf16.mxu0 %v2077_v5 }
  0xb6   :  { %v734_v28 = vmul.bf16 %v702_v62, %v2694_v23  ;;  %v1355_v32 = vmul.bf16 %v1323_v12, %v702_v62  ;;  %v351_v9 = vsub.f32 %v218_v55, %v2392_v42  ;;  %v1182_v30 = vsub.f32 %v218_v55, %v2401_v45 }
  0xb7   :  { %814 = vmatprep.subr.bf16.mxu1 %v735_v20  ;;  %1435 = vmatprep.subr.bf16.mxu0 %v1356_v49  ;;  %v2711_v50 = vsub.f32 %v122_v15, %v250_v8  ;;  %v463_v37 = vsub.f32 %v2706_v11, %v2395_v43  ;;  %v350_v26 = vsub.f32 %v218_v55, %v2404_v46  ;;  %v92_v60 = vadd.s32 136, %v2328_v1 }
  0xb8   :  { %815 = vmatpush1.bf16.msra.mxu1 %v734_v28  ;;  %1436 = vmatpush1.bf16.msra.mxu0 %v1355_v32  ;;  %v399_v56 = vpack.c.bf16 %v351_v9, %v349_v27  ;;  %v1230_v39 = vpack.c.bf16 %v1182_v30, %v1180_v34  ;;  %v462_v14 = vsub.f32 %v2706_v11, %v2407_v47  ;;  %v123_v62 = vcvt.s32.f32 %v2697_v58 }
  0xb9   :  { %v465_v15 = vsub.f32 %v2711_v50, %v2395_v43  ;;  %v398_v12 = vpack.c.bf16 %v350_v26, %v348_v33  ;;  %v464_v5 = vsub.f32 %v2711_v50, %v2407_v47  ;;  %v1179_v20 = vsub.f32 %v217_v54, %v2398_v44 }
  0xba   :  { %v545_v49 = vand.u32 2147450879, %v399_v56  ;;  %v1262_v8 = vand.u32 2147450879, %v1230_v39  ;;  %v1181_v28 = vsub.f32 %v218_v55, %v2398_v44  ;;  %v124_v27 = vcvt.s32.f32 %v92_v60 }
  0xbb   :  { %v513_v34 = vpack.c.bf16 %v465_v15, %v463_v37  ;;  %v512_v32 = vpack.c.bf16 %v464_v5, %v462_v14  ;;  %v544_v9 = vand.u32 2147450879, %v398_v12  ;;  %v155_v30 = vadd.f32 0.5, %v123_v62 }
  0xbc   :  { %v577_v4 = vsub.bf16 1065369472, %v545_v49  ;;  %v1294_v58 = vsub.bf16 1065369472, %v1262_v8  ;;  %v1229_v13 = vpack.c.bf16 %v1181_v28, %v1179_v20  ;;  %v156_v18 = vadd.f32 0.5, %v124_v27 }
  0xbd   :  { %v641_v23 = vand.u32 2147450879, %v513_v34  ;;  %v576_v33 = vsub.bf16 1065369472, %v544_v9  ;;  %v640_v26 = vand.u32 2147450879, %v512_v32 }
  0xbe   :  { %v2729_v54 = vmax.bf16 %v3435_v6, %v577_v4  ;;  %v1326_v55 = vmax.bf16 %v3435_v6, %v1294_v58  ;;  %v1261_v60 = vand.u32 2147450879, %v1229_v13  ;;  %v187_v37 = vmul.f32 0.0625, %v155_v30 }
  0xbf   :  { %v673_v56 = vsub.bf16 1065369472, %v641_v23  ;;  %v2733_v39 = vmax.bf16 %v3435_v6, %v576_v33  ;;  %v672_v14 = vsub.bf16 1065369472, %v640_v26  ;;  %v188_v15 = vmul.f32 0.0625, %v156_v18 }
  0xc0   :  { %3438 = vst [vmem:[#allocation26_spill] sm:$0xff] %v2729_v54  ;;  %v1293_v12 = vsub.bf16 1065369472, %v1261_v60  ;;  %v219_v5 = vfloor.f32 %v187_v37  ;;  %v2736_v20 = vadd.s32 144, %v2328_v1  ;;  %v2739_v49 = vadd.s32 152, %v2328_v1 }
  0xc1   :  { %3439 = vst [vmem:[#allocation27_spill] sm:$0xff] %v2733_v39  ;;  %v705_v4 = vmax.bf16 %v3435_v6, %v673_v56  ;;  %v704_v8 = vmax.bf16 %v3435_v6, %v672_v14  ;;  %v220_v13 = vfloor.f32 %v188_v15  ;;  %v2744_v23 = vadd.s32 160, %v2328_v1 }
  0xc2   :  { %v1325_v28 = vmax.bf16 %v3435_v6, %v1293_v12  ;;  %v251_v34 = vmul.f32 16.0, %v219_v5  ;;  %v353_v18 = vsub.f32 %v219_v5, %v2392_v42  ;;  %v1184_v32 = vsub.f32 %v219_v5, %v2401_v45 }
  0xc3   :  { %v737_v9 = vmul.bf16 %v705_v4, %v2729_v54  ;;  %v1358_v30 = vmul.bf16 %v1326_v55, %v705_v4  ;;  %v736_v58 = vmul.bf16 %v704_v8, %v2733_v39  ;;  %v252_v33 = vmul.f32 16.0, %v220_v13 }
  0xc4   :  { %v1357_v26 = vmul.bf16 %v1325_v28, %v704_v8  ;;  %v2751_v60 = vsub.f32 %v123_v62, %v251_v34  ;;  %v355_v37 = vsub.f32 %v220_v13, %v2392_v42  ;;  %v1186_v56 = vsub.f32 %v220_v13, %v2401_v45 }
  0xc5   :  { %816 = vmatprep.subr.bf16.mxu1 %v737_v9  ;;  %1437 = vmatprep.subr.bf16.mxu0 %v1358_v30  ;;  %v2755_v14 = vsub.f32 %v124_v27, %v252_v33  ;;  %v352_v15 = vsub.f32 %v219_v5, %v2404_v46  ;;  %v354_v12 = vsub.f32 %v220_v13, %v2404_v46  ;;  %v125_v55 = vcvt.s32.f32 %v2736_v20 }
  0xc6   :  { %3440 = vst [vmem:[#allocation28_spill] sm:$0xff] %v2751_v60  ;;  %817 = vmatpush1.bf16.msra.mxu1 %v736_v58  ;;  %1438 = vmatpush1.bf16.msra.mxu0 %v1357_v26  ;;  %v401_v4 = vpack.c.bf16 %v355_v37, %v353_v18  ;;  %v467_v62 = vsub.f32 %v2751_v60, %v2395_v43  ;;  %v126_v28 = vcvt.s32.f32 %v2739_v49 }
  0xc7   :  { %3441 = vst [vmem:[#allocation29_spill] sm:$0xff] %v2755_v14  ;;  %v1232_v8 = vpack.c.bf16 %v1186_v56, %v1184_v32  ;;  %v469_v34 = vsub.f32 %v2755_v14, %v2395_v43  ;;  %v400_v27 = vpack.c.bf16 %v354_v12, %v352_v15  ;;  %v466_v9 = vsub.f32 %v2751_v60, %v2407_v47 }
  0xc8   :  { %v468_v30 = vsub.f32 %v2755_v14, %v2407_v47  ;;  %v547_v20 = vand.u32 2147450879, %v401_v4  ;;  %v1183_v18 = vsub.f32 %v219_v5, %v2398_v44  ;;  %v1185_v33 = vsub.f32 %v220_v13, %v2398_v44 }
  0xc9   :  { %v1264_v58 = vand.u32 2147450879, %v1232_v8  ;;  %v515_v26 = vpack.c.bf16 %v469_v34, %v467_v62  ;;  %v546_v37 = vand.u32 2147450879, %v400_v27  ;;  %v157_v49 = vadd.f32 0.5, %v125_v55 }
  0xca   :  { %v514_v32 = vpack.c.bf16 %v468_v30, %v466_v9  ;;  %v579_v56 = vsub.bf16 1065369472, %v547_v20  ;;  %v1231_v39 = vpack.c.bf16 %v1185_v33, %v1183_v18  ;;  %v158_v15 = vadd.f32 0.5, %v126_v28 }
  0xcb   :  { %v1296_v7 = vsub.bf16 1065369472, %v1264_v58  ;;  %v643_v12 = vand.u32 2147450879, %v515_v26  ;;  %v578_v54 = vsub.bf16 1065369472, %v546_v37  ;;  %v3388_v60 = vcvt.s32.f32 %v2744_v23 }
  0xcc   :  { %v642_v38 = vand.u32 2147450879, %v514_v32  ;;  %v2773_v4 = vmax.bf16 %v3435_v6, %v579_v56  ;;  %v1263_v8 = vand.u32 2147450879, %v1231_v39  ;;  %v189_v13 = vmul.f32 0.0625, %v157_v49 }
  0xcd   :  { %v1328_v5 = vmax.bf16 %v3435_v6, %v1296_v7  ;;  %v675_v62 = vsub.bf16 1065369472, %v643_v12  ;;  %v2777_v34 = vmax.bf16 %v3435_v6, %v578_v54  ;;  %v190_v9 = vmul.f32 0.0625, %v158_v15 }
  0xce   :  { %3442 = vst [vmem:[#allocation30_spill] sm:$0xff] %v2773_v4  ;;  %v674_v27 = vsub.bf16 1065369472, %v642_v38  ;;  %v1295_v30 = vsub.bf16 1065369472, %v1263_v8  ;;  %v221_v20 = vfloor.f32 %v189_v13  ;;  %v2780_v58 = vadd.s32 168, %v2328_v1 }
  0xcf   :  { %3443 = vst [vmem:[#allocation31_spill] sm:$0xff] %v2777_v34  ;;  %v159_v18 = vadd.f32 0.5, %v3388_v60  ;;  %v707_v33 = vmax.bf16 %v3435_v6, %v675_v62  ;;  %v222_v39 = vfloor.f32 %v190_v9  ;;  %v2787_v26 = vadd.s32 176, %v2328_v1 }
  0xd0   :  { %v706_v7 = vmax.bf16 %v3435_v6, %v674_v27  ;;  %v1327_v54 = vmax.bf16 %v3435_v6, %v1295_v30  ;;  %v253_v38 = vmul.f32 16.0, %v221_v20  ;;  %v357_v32 = vsub.f32 %v221_v20, %v2392_v42 }
  0xd1   :  { %v1188_v37 = vsub.f32 %v221_v20, %v2401_v45  ;;  %v739_v49 = vmul.bf16 %v707_v33, %v2773_v4  ;;  %v1360_v56 = vmul.bf16 %v1328_v5, %v707_v33  ;;  %v254_v12 = vmul.f32 16.0, %v222_v39 }
  0xd2   :  { %v738_v15 = vmul.bf16 %v706_v7, %v2777_v34  ;;  %v1359_v8 = vmul.bf16 %v1327_v54, %v706_v7  ;;  %v2794_v13 = vsub.f32 %v125_v55, %v253_v38  ;;  %v359_v62 = vsub.f32 %v222_v39, %v2392_v42 }
  0xd3   :  { %v1190_v27 = vsub.f32 %v222_v39, %v2401_v45  ;;  %818 = vmatprep.subr.bf16.mxu1 %v739_v49  ;;  %1439 = vmatprep.subr.bf16.mxu0 %v1360_v56  ;;  %v2798_v9 = vsub.f32 %v126_v28, %v254_v12  ;;  %v356_v30 = vsub.f32 %v221_v20, %v2404_v46  ;;  %v128_v5 = vcvt.s32.f32 %v2780_v58 }
  0xd4   :  { %3444 = vst [vmem:[#allocation32_spill] sm:$0xff] %v2794_v13  ;;  %v358_v60 = vsub.f32 %v222_v39, %v2404_v46  ;;  %819 = vmatpush1.bf16.msra.mxu1 %v738_v15  ;;  %1440 = vmatpush1.bf16.msra.mxu0 %v1359_v8  ;;  %v403_v33 = vpack.c.bf16 %v359_v62, %v357_v32  ;;  %v191_v54 = vmul.f32 0.0625, %v159_v18  ;;  %v3402_v21 = vcvt.s32.f32 %v2787_v26 }
  0xd5   :  { %v471_v55 = vsub.f32 %v2794_v13, %v2395_v43  ;;  %v1234_v7 = vpack.c.bf16 %v1190_v27, %v1188_v37  ;;  %v473_v38 = vsub.f32 %v2798_v9, %v2395_v43  ;;  %v470_v28 = vsub.f32 %v2794_v13, %v2407_v47 }
  0xd6   :  { %v402_v49 = vpack.c.bf16 %v358_v60, %v356_v30  ;;  %v472_v56 = vsub.f32 %v2798_v9, %v2407_v47  ;;  %v549_v12 = vand.u32 2147450879, %v403_v33  ;;  %v1187_v15 = vsub.f32 %v221_v20, %v2398_v44 }
  0xd7   :  { %v1266_v58 = vand.u32 2147450879, %v1234_v7  ;;  %v1189_v32 = vsub.f32 %v222_v39, %v2398_v44  ;;  %v517_v8 = vpack.c.bf16 %v473_v38, %v471_v55  ;;  %v160_v18 = vadd.f32 0.5, %v128_v5 }
  0xd8   :  { %v516_v62 = vpack.c.bf16 %v472_v56, %v470_v28  ;;  %v548_v37 = vand.u32 2147450879, %v402_v49  ;;  %v581_v27 = vsub.bf16 1065369472, %v549_v12  ;;  %v223_v60 = vfloor.f32 %v191_v54 }
  0xd9   :  { %v1298_v34 = vsub.bf16 1065369472, %v1266_v58  ;;  %v1233_v4 = vpack.c.bf16 %v1189_v32, %v1187_v15  ;;  %v645_v30 = vand.u32 2147450879, %v517_v8  ;;  %v192_v39 = vmul.f32 0.0625, %v160_v18 }
  0xda   :  { %v580_v14 = vsub.bf16 1065369472, %v548_v37  ;;  %v644_v13 = vand.u32 2147450879, %v516_v62  ;;  %v2815_v33 = vmax.bf16 %v3435_v6, %v581_v27  ;;  %v255_v28 = vmul.f32 16.0, %v223_v60 }
  0xdb   :  { %v1330_v20 = vmax.bf16 %v3435_v6, %v1298_v34  ;;  %v1265_v7 = vand.u32 2147450879, %v1233_v4  ;;  %v677_v55 = vsub.bf16 1065369472, %v645_v30  ;;  %v224_v54 = vfloor.f32 %v192_v39 }
  0xdc   :  { %3445 = vst [vmem:[#allocation33_spill] sm:$0xff] %v2815_v33  ;;  %v2819_v38 = vmax.bf16 %v3435_v6, %v580_v14  ;;  %v676_v49 = vsub.bf16 1065369472, %v644_v13  ;;  %v361_v12 = vsub.f32 %v223_v60, %v2392_v42  ;;  %v1192_v58 = vsub.f32 %v223_v60, %v2401_v45 }
  0xdd   :  { %v1297_v56 = vsub.bf16 1065369472, %v1265_v7  ;;  %v709_v15 = vmax.bf16 %v3435_v6, %v677_v55  ;;  %v3447_v34 = vcvt.s32.f32 %v2744_v23  ;;  %v360_v8 = vsub.f32 %v223_v60, %v2404_v46 }
  0xde   :  { %3446 = vst [vmem:[#allocation34_spill] sm:$0xff] %v2819_v38  ;;  %v708_v32 = vmax.bf16 %v3435_v6, %v676_v49  ;;  %v256_v13 = vmul.f32 16.0, %v224_v54  ;;  %v363_v62 = vsub.f32 %v224_v54, %v2392_v42  ;;  %v1194_v37 = vsub.f32 %v224_v54, %v2401_v45 }
  0xdf   :  { %v2827_v4 = vsub.f32 %v3447_v34, %v255_v28  ;;  %v1329_v14 = vmax.bf16 %v3435_v6, %v1297_v56  ;;  %v741_v18 = vmul.bf16 %v709_v15, %v2815_v33  ;;  %v1362_v27 = vmul.bf16 %v1330_v20, %v709_v15 }
  0xe0   :  { %v740_v30 = vmul.bf16 %v708_v32, %v2819_v38  ;;  %v2837_v39 = vsub.f32 %v128_v5, %v256_v13  ;;  %v405_v55 = vpack.c.bf16 %v363_v62, %v361_v12  ;;  %v1236_v49 = vpack.c.bf16 %v1194_v37, %v1192_v58 }
  0xe1   :  { %3448 = vst [vmem:[#allocation35_spill] sm:$0xff] %v2827_v4  ;;  %v475_v7 = vsub.f32 %v2827_v4, %v2395_v43  ;;  %v1361_v23 = vmul.bf16 %v1329_v14, %v708_v32  ;;  %820 = vmatprep.subr.bf16.mxu1 %v741_v18  ;;  %1441 = vmatprep.subr.bf16.mxu0 %v1362_v27  ;;  %v98_v20 = vadd.s32 184, %v2328_v1  ;;  %v161_v62 = vadd.f32 0.5, %v3402_v21 }
  0xe2   :  { %3449 = vst [vmem:[#allocation36_spill] sm:$0xff] %v2837_v39  ;;  %v362_v28 = vsub.f32 %v224_v54, %v2404_v46  ;;  %v474_v56 = vsub.f32 %v2827_v4, %v2407_v47  ;;  %v1191_v34 = vsub.f32 %v223_v60, %v2398_v44  ;;  %821 = vmatpush1.bf16.msra.mxu1 %v740_v30  ;;  %v551_v5 = vand.u32 2147450879, %v405_v55 }
  0xe3   :  { %1442 = vmatpush1.bf16.msra.mxu0 %v1361_v23  ;;  %v477_v15 = vsub.f32 %v2837_v39, %v2395_v43  ;;  %v1268_v32 = vand.u32 2147450879, %v1236_v49  ;;  %v476_v12 = vsub.f32 %v2837_v39, %v2407_v47  ;;  %v1193_v14 = vsub.f32 %v224_v54, %v2398_v44 }
  0xe4   :  { %v404_v58 = vpack.c.bf16 %v362_v28, %v360_v8  ;;  %v130_v13 = vcvt.s32.f32 %v98_v20  ;;  %v583_v37 = vsub.bf16 1065369472, %v551_v5  ;;  %v193_v33 = vmul.f32 0.0625, %v161_v62 }
  0xe5   :  { %v519_v60 = vpack.c.bf16 %v477_v15, %v475_v7  ;;  %v1300_v18 = vsub.bf16 1065369472, %v1268_v32  ;;  %v518_v27 = vpack.c.bf16 %v476_v12, %v474_v56  ;;  %v1235_v23 = vpack.c.bf16 %v1193_v14, %v1191_v34 }
  0xe6   :  { %v550_v30 = vand.u32 2147450879, %v404_v58  ;;  %v162_v38 = vadd.f32 0.5, %v130_v13  ;;  %v2852_v55 = vmax.bf16 %v3435_v6, %v583_v37  ;;  %v225_v4 = vfloor.f32 %v193_v33 }
  0xe7   :  { %v647_v49 = vand.u32 2147450879, %v519_v60  ;;  %v1332_v8 = vmax.bf16 %v3435_v6, %v1300_v18  ;;  %v646_v28 = vand.u32 2147450879, %v518_v27  ;;  %v1267_v20 = vand.u32 2147450879, %v1235_v23 }
  0xe8   :  { %3450 = vst [vmem:[#allocation37_spill] sm:$0xff] %v2852_v55  ;;  %v582_v54 = vsub.bf16 1065369472, %v550_v30  ;;  %v194_v39 = vmul.f32 0.0625, %v162_v38  ;;  %v2856_v15 = vadd.s32 192, %v2328_v1  ;;  %v2859_v56 = vadd.s32 200, %v2328_v1 }
  0xe9   :  { %v679_v21 = vsub.bf16 1065369472, %v647_v49  ;;  %v678_v7 = vsub.bf16 1065369472, %v646_v28  ;;  %v1299_v5 = vsub.bf16 1065369472, %v1267_v20  ;;  %v365_v33 = vsub.f32 %v225_v4, %v2392_v42 }
  0xea   :  { %v2862_v34 = vmax.bf16 %v3435_v6, %v582_v54  ;;  %v226_v32 = vfloor.f32 %v194_v39  ;;  %v257_v12 = vmul.f32 16.0, %v225_v4  ;;  %v1196_v38 = vsub.f32 %v225_v4, %v2401_v45 }
  0xeb   :  { %v711_v58 = vmax.bf16 %v3435_v6, %v679_v21  ;;  %v710_v14 = vmax.bf16 %v3435_v6, %v678_v7  ;;  %v1331_v62 = vmax.bf16 %v3435_v6, %v1299_v5  ;;  %v3452_v37 = vcvt.s32.f32 %v2787_v26 }
  0xec   :  { %3451 = vst [vmem:[#allocation38_spill] sm:$0xff] %v2862_v34  ;;  %v258_v60 = vmul.f32 16.0, %v226_v32  ;;  %v367_v27 = vsub.f32 %v226_v32, %v2392_v42  ;;  %v1198_v23 = vsub.f32 %v226_v32, %v2401_v45  ;;  %v364_v7 = vsub.f32 %v225_v4, %v2404_v46 }
  0xed   :  { %v2871_v18 = vsub.f32 %v3452_v37, %v257_v12  ;;  %v743_v39 = vmul.bf16 %v711_v58, %v2852_v55  ;;  %v1364_v30 = vmul.bf16 %v1332_v8, %v711_v58  ;;  %v742_v21 = vmul.bf16 %v710_v14, %v2862_v34 }
  0xee   :  { %v1363_v49 = vmul.bf16 %v1331_v62, %v710_v14  ;;  %v2877_v28 = vsub.f32 %v130_v13, %v258_v60  ;;  %v407_v54 = vpack.c.bf16 %v367_v27, %v365_v33  ;;  %v1238_v26 = vpack.c.bf16 %v1198_v23, %v1196_v38 }
  0xef   :  { %v479_v20 = vsub.f32 %v2871_v18, %v2395_v43  ;;  %822 = vmatprep.subr.bf16.mxu1 %v743_v39  ;;  %1443 = vmatprep.subr.bf16.mxu0 %v1364_v30  ;;  %v366_v5 = vsub.f32 %v226_v32, %v2404_v46  ;;  %v131_v8 = vcvt.s32.f32 %v2856_v15  ;;  %v478_v58 = vsub.f32 %v2871_v18, %v2407_v47 }
  0xf0   :  { %3453 = vst [vmem:[#allocation39_spill] sm:$0xff] %v2877_v28  ;;  %823 = vmatpush1.bf16.msra.mxu1 %v742_v21  ;;  %1444 = vmatpush1.bf16.msra.mxu0 %v1363_v49  ;;  %v481_v12 = vsub.f32 %v2877_v28, %v2395_v43  ;;  %v553_v13 = vand.u32 2147450879, %v407_v54  ;;  %v480_v14 = vsub.f32 %v2877_v28, %v2407_v47  ;;  %v1270_v33 = vand.u32 2147450879, %v1238_v26 }
  0xf1   :  { %v406_v38 = vpack.c.bf16 %v366_v5, %v364_v7  ;;  %v1195_v62 = vsub.f32 %v225_v4, %v2398_v44  ;;  %v1197_v60 = vsub.f32 %v226_v32, %v2398_v44  ;;  %v132_v39 = vcvt.s32.f32 %v2859_v56 }
  0xf2   :  { %v521_v37 = vpack.c.bf16 %v481_v12, %v479_v20  ;;  %v585_v15 = vsub.bf16 1065369472, %v553_v13  ;;  %v520_v27 = vpack.c.bf16 %v480_v14, %v478_v58  ;;  %v1302_v30 = vsub.bf16 1065369472, %v1270_v33 }
  0xf3   :  { %v552_v21 = vand.u32 2147450879, %v406_v38  ;;  %v1237_v23 = vpack.c.bf16 %v1197_v60, %v1195_v62  ;;  %v163_v49 = vadd.f32 0.5, %v131_v8  ;;  %v164_v26 = vadd.f32 0.5, %v132_v39 }
  0xf4   :  { %v2894_v54 = vmax.bf16 %v3435_v6, %v585_v15  ;;  %v649_v34 = vand.u32 2147450879, %v521_v37  ;;  %v648_v55 = vand.u32 2147450879, %v520_v27  ;;  %v1334_v7 = vmax.bf16 %v3435_v6, %v1302_v30 }
  0xf5   :  { %v584_v4 = vsub.bf16 1065369472, %v552_v21  ;;  %v1269_v5 = vand.u32 2147450879, %v1237_v23  ;;  %v195_v32 = vmul.f32 0.0625, %v163_v49  ;;  %v196_v13 = vmul.f32 0.0625, %v164_v26 }
  0xf6   :  { %3454 = vst [vmem:[#allocation40_spill] sm:$0xff] %v2894_v54  ;;  %v681_v20 = vsub.bf16 1065369472, %v649_v34  ;;  %v680_v12 = vsub.bf16 1065369472, %v648_v55  ;;  %v2898_v56 = vadd.s32 208, %v2328_v1 }
  0xf7   :  { %v2901_v58 = vmax.bf16 %v3435_v6, %v584_v4  ;;  %v1301_v14 = vsub.bf16 1065369472, %v1269_v5  ;;  %v227_v33 = vfloor.f32 %v195_v32  ;;  %v2904_v38 = vadd.s32 216, %v2328_v1 }
  0xf8   :  { %v713_v62 = vmax.bf16 %v3435_v6, %v681_v20  ;;  %v712_v60 = vmax.bf16 %v3435_v6, %v680_v12  ;;  %v228_v37 = vfloor.f32 %v196_v13  ;;  %v3405_v34 = vcvt.s32.f32 %v2898_v56 }
  0xf9   :  { %3455 = vst [vmem:[#allocation41_spill] sm:$0xff] %v2901_v58  ;;  %v1333_v55 = vmax.bf16 %v3435_v6, %v1301_v14  ;;  %v259_v15 = vmul.f32 16.0, %v227_v33  ;;  %v369_v27 = vsub.f32 %v227_v33, %v2392_v42  ;;  %v1200_v30 = vsub.f32 %v227_v33, %v2401_v45 }
  0xfa   :  { %v745_v21 = vmul.bf16 %v713_v62, %v2894_v54  ;;  %v1366_v23 = vmul.bf16 %v1334_v7, %v713_v62  ;;  %v744_v49 = vmul.bf16 %v712_v60, %v2901_v58  ;;  %v260_v26 = vmul.f32 16.0, %v228_v37 }
  0xfb   :  { %v1365_v4 = vmul.bf16 %v1333_v55, %v712_v60  ;;  %v2914_v5 = vsub.f32 %v131_v8, %v259_v15  ;;  %v371_v32 = vsub.f32 %v228_v37, %v2392_v42  ;;  %v1202_v20 = vsub.f32 %v228_v37, %v2401_v45 }
  0xfc   :  { %824 = vmatprep.subr.bf16.mxu1 %v745_v21  ;;  %1445 = vmatprep.subr.bf16.mxu0 %v1366_v23  ;;  %v2918_v12 = vsub.f32 %v132_v39, %v260_v26  ;;  %v368_v13 = vsub.f32 %v227_v33, %v2404_v46  ;;  %v370_v14 = vsub.f32 %v228_v37, %v2404_v46  ;;  %v134_v7 = vcvt.s32.f32 %v2904_v38 }
  0xfd   :  { %3456 = vst [vmem:[#allocation42_spill] sm:$0xff] %v2914_v5  ;;  %825 = vmatpush1.bf16.msra.mxu1 %v744_v49  ;;  %1446 = vmatpush1.bf16.msra.mxu0 %v1365_v4  ;;  %v409_v62 = vpack.c.bf16 %v371_v32, %v369_v27  ;;  %v483_v8 = vsub.f32 %v2914_v5, %v2395_v43  ;;  %v165_v55 = vadd.f32 0.5, %v3405_v34 }
  0xfe   :  { %3457 = vst [vmem:[#allocation43_spill] sm:$0xff] %v2918_v12  ;;  %v1240_v60 = vpack.c.bf16 %v1202_v20, %v1200_v30  ;;  %v485_v39 = vsub.f32 %v2918_v12, %v2395_v43  ;;  %v408_v15 = vpack.c.bf16 %v370_v14, %v368_v13  ;;  %v482_v21 = vsub.f32 %v2914_v5, %v2407_v47 }
  0xff   :  { %v484_v38 = vsub.f32 %v2918_v12, %v2407_v47  ;;  %v555_v23 = vand.u32 2147450879, %v409_v62  ;;  %v1199_v27 = vsub.f32 %v227_v33, %v2398_v44  ;;  %v1201_v26 = vsub.f32 %v228_v37, %v2398_v44 }
 0x100   :  { %v1272_v49 = vand.u32 2147450879, %v1240_v60  ;;  %v523_v30 = vpack.c.bf16 %v485_v39, %v483_v8  ;;  %v554_v32 = vand.u32 2147450879, %v408_v15  ;;  %v166_v20 = vadd.f32 0.5, %v134_v7 }
 0x101   :  { %v522_v4 = vpack.c.bf16 %v484_v38, %v482_v21  ;;  %v587_v34 = vsub.bf16 1065369472, %v555_v23  ;;  %v1239_v54 = vpack.c.bf16 %v1201_v26, %v1199_v27  ;;  %v197_v13 = vmul.f32 0.0625, %v165_v55 }
 0x102   :  { %v1304_v58 = vsub.bf16 1065369472, %v1272_v49  ;;  %v651_v14 = vand.u32 2147450879, %v523_v30  ;;  %v586_v28 = vsub.bf16 1065369472, %v554_v32  ;;  %v3458_v12 = vsub.f32 %v2389_v41, %v2401_v45 }
 0x103   :  { %v650_v5 = vand.u32 2147450879, %v522_v4  ;;  %v3459_v62 = vsub.f32 %v2409_v48, %v2401_v45  ;;  %v2944_v37 = vmax.bf16 %v3435_v6, %v587_v34  ;;  %v1271_v60 = vand.u32 2147450879, %v1239_v54 }
 0x104   :  { %v1336_v8 = vmax.bf16 %v3435_v6, %v1304_v58  ;;  %v198_v39 = vmul.f32 0.0625, %v166_v20  ;;  %v683_v15 = vsub.bf16 1065369472, %v651_v14  ;;  %v2948_v55 = vmax.bf16 %v3435_v6, %v586_v28 }
 0x105   :  { %v2941_v33 = vpack.c.bf16 %v3459_v62, %v3458_v12  ;;  %3460 = vst [vmem:[#allocation44_spill] sm:$0xff] %v2944_v37  ;;  %v682_v21 = vsub.bf16 1065369472, %v650_v5  ;;  %v229_v38 = vfloor.f32 %v197_v13  ;;  %v1303_v23 = vsub.bf16 1065369472, %v1271_v60 }
 0x106   :  { %3461 = vst [vmem:[#allocation45_spill] sm:$0xff] %v2948_v55  ;;  %v230_v41 = vfloor.f32 %v198_v39  ;;  %v2951_v49 = vadd.s32 224, %v2328_v1  ;;  %v2954_v48 = vadd.s32 232, %v2328_v1  ;;  %v715_v34 = vmax.bf16 %v3435_v6, %v683_v15 }
 0x107   :  { %v714_v58 = vmax.bf16 %v3435_v6, %v682_v21  ;;  %v261_v54 = vmul.f32 16.0, %v229_v38  ;;  %v373_v12 = vsub.f32 %v229_v38, %v2392_v42  ;;  %v1335_v28 = vmax.bf16 %v3435_v6, %v1303_v23 }
 0x108   :  { %v262_v27 = vmul.f32 16.0, %v230_v41  ;;  %v375_v5 = vsub.f32 %v230_v41, %v2392_v42  ;;  %v1204_v26 = vsub.f32 %v229_v38, %v2401_v45  ;;  %v747_v30 = vmul.bf16 %v715_v34, %v2944_v37 }
 0x109   :  { %v1368_v4 = vmul.bf16 %v1336_v8, %v715_v34  ;;  %v746_v32 = vmul.bf16 %v714_v58, %v2948_v55  ;;  %v3462_v20 = vcvt.s32.f32 %v2898_v56  ;;  %v1367_v14 = vmul.bf16 %v1335_v28, %v714_v58 }
 0x10a   :  { %v2968_v62 = vsub.f32 %v134_v7, %v262_v27  ;;  %v411_v60 = vpack.c.bf16 %v375_v5, %v373_v12  ;;  %v1206_v39 = vsub.f32 %v230_v41, %v2401_v45  ;;  %826 = vmatprep.subr.bf16.mxu1 %v747_v30  ;;  %v372_v21 = vsub.f32 %v229_v38, %v2404_v46 }
 0x10b   :  { %v2966_v13 = vsub.f32 %v3462_v20, %v261_v54  ;;  %1447 = vmatprep.subr.bf16.mxu0 %v1368_v4  ;;  %v374_v8 = vsub.f32 %v230_v41, %v2404_v46  ;;  %v135_v23 = vcvt.s32.f32 %v2951_v49  ;;  %827 = vmatpush1.bf16.msra.mxu1 %v746_v32  ;;  %v1203_v28 = vsub.f32 %v229_v38, %v2398_v44 }
 0x10c   :  { %3464 = vst [vmem:[#allocation47_spill] sm:$0xff] %v2968_v62  ;;  %1448 = vmatpush1.bf16.msra.mxu0 %v1367_v14  ;;  %v489_v56 = vsub.f32 %v2968_v62, %v2395_v43  ;;  %v557_v7 = vand.u32 2147450879, %v411_v60  ;;  %v1242_v34 = vpack.c.bf16 %v1206_v39, %v1204_v26  ;;  %v488_v12 = vsub.f32 %v2968_v62, %v2407_v47 }
 0x10d   :  { %3463 = vst [vmem:[#allocation46_spill] sm:$0xff] %v2966_v13  ;;  %v487_v15 = vsub.f32 %v2966_v13, %v2395_v43  ;;  %v486_v58 = vsub.f32 %v2966_v13, %v2407_v47  ;;  %v410_v54 = vpack.c.bf16 %v374_v8, %v372_v21  ;;  %v1205_v27 = vsub.f32 %v230_v41, %v2398_v44 }
 0x10e   :  { %v589_v49 = vsub.bf16 1065369472, %v557_v7  ;;  %v1274_v30 = vand.u32 2147450879, %v1242_v34  ;;  %v136_v4 = vcvt.s32.f32 %v2954_v48  ;;  %v167_v26 = vadd.f32 0.5, %v135_v23 }
 0x10f   :  { %v525_v5 = vpack.c.bf16 %v489_v56, %v487_v15  ;;  %v524_v32 = vpack.c.bf16 %v488_v12, %v486_v58  ;;  %v556_v20 = vand.u32 2147450879, %v410_v54  ;;  %v1241_v14 = vpack.c.bf16 %v1205_v27, %v1203_v28 }
 0x110   :  { %v2986_v60 = vmax.bf16 %v3435_v6, %v589_v49  ;;  %v1306_v21 = vsub.bf16 1065369472, %v1274_v30  ;;  %v168_v8 = vadd.f32 0.5, %v136_v4  ;;  %v199_v48 = vmul.f32 0.0625, %v167_v26 }
 0x111   :  { %v653_v39 = vand.u32 2147450879, %v525_v5  ;;  %v588_v55 = vsub.bf16 1065369472, %v556_v20  ;;  %v652_v37 = vand.u32 2147450879, %v524_v32 }
 0x112   :  { %3465 = vst [vmem:[#allocation48_spill] sm:$0xff] %v2986_v60  ;;  %v1273_v38 = vand.u32 2147450879, %v1241_v14  ;;  %v1338_v56 = vmax.bf16 %v3435_v6, %v1306_v21  ;;  %v200_v7 = vmul.f32 0.0625, %v168_v8  ;;  %v2995_v12 = vadd.s32 240, %v2328_v1 }
 0x113   :  { %v685_v15 = vsub.bf16 1065369472, %v653_v39  ;;  %v2992_v34 = vmax.bf16 %v3435_v6, %v588_v55  ;;  %v684_v58 = vsub.bf16 1065369472, %v652_v37  ;;  %v231_v27 = vfloor.f32 %v199_v48 }
 0x114   :  { %v1305_v54 = vsub.bf16 1065369472, %v1273_v38  ;;  %v232_v5 = vfloor.f32 %v200_v7  ;;  %v2999_v49 = vadd.s32 248, %v2328_v1  ;;  %v137_v20 = vcvt.s32.f32 %v2995_v12 }
 0x115   :  { %3466 = vst [vmem:[#allocation49_spill] sm:$0xff] %v2992_v34  ;;  %v717_v28 = vmax.bf16 %v3435_v6, %v685_v15  ;;  %v716_v30 = vmax.bf16 %v3435_v6, %v684_v58  ;;  %v263_v26 = vmul.f32 16.0, %v231_v27  ;;  %v377_v38 = vsub.f32 %v231_v27, %v2392_v42 }
 0x116   :  { %v1337_v32 = vmax.bf16 %v3435_v6, %v1305_v54  ;;  %v264_v39 = vmul.f32 16.0, %v232_v5  ;;  %v379_v1 = vsub.f32 %v232_v5, %v2392_v42  ;;  %v1208_v7 = vsub.f32 %v231_v27, %v2401_v45 }
 0x117   :  { %v749_v37 = vmul.bf16 %v717_v28, %v2986_v60  ;;  %v1370_v14 = vmul.bf16 %v1338_v56, %v717_v28  ;;  %v748_v21 = vmul.bf16 %v716_v30, %v2992_v34  ;;  %v3009_v15 = vsub.f32 %v135_v23, %v263_v26 }
 0x118   :  { %v1369_v8 = vmul.bf16 %v1337_v32, %v716_v30  ;;  %v3011_v48 = vsub.f32 %v136_v4, %v264_v39  ;;  %v138_v58 = vcvt.s32.f32 %v2999_v49  ;;  %v413_v56 = vpack.c.bf16 %v379_v1, %v377_v38 }
 0x119   :  { %828 = vmatprep.subr.bf16.mxu1 %v749_v37  ;;  %1449 = vmatprep.subr.bf16.mxu0 %v1370_v14  ;;  %3467 = vst [vmem:[#allocation50_spill] sm:$0xff] %v3009_v15  ;;  %v1210_v54 = vsub.f32 %v232_v5, %v2401_v45  ;;  %v376_v12 = vsub.f32 %v231_v27, %v2404_v46  ;;  %v169_v28 = vadd.f32 0.5, %v137_v20 }
 0x11a   :  { %3468 = vst [vmem:[#allocation51_spill] sm:$0xff] %v3011_v48  ;;  %829 = vmatpush1.bf16.msra.mxu1 %v748_v21  ;;  %1450 = vmatpush1.bf16.msra.mxu0 %v1369_v8  ;;  %v491_v30 = vsub.f32 %v3009_v15, %v2395_v43  ;;  %v493_v23 = vsub.f32 %v3011_v48, %v2395_v43  ;;  %v559_v49 = vand.u32 2147450879, %v413_v56  ;;  %v170_v38 = vadd.f32 0.5, %v138_v58 }
 0x11b   :  { %v378_v4 = vsub.f32 %v232_v5, %v2404_v46  ;;  %v490_v32 = vsub.f32 %v3009_v15, %v2407_v47  ;;  %v1244_v37 = vpack.c.bf16 %v1210_v54, %v1208_v7  ;;  %v492_v14 = vsub.f32 %v3011_v48, %v2407_v47 }
 0x11c   :  { %v1207_v26 = vsub.f32 %v231_v27, %v2398_v44  ;;  %v527_v39 = vpack.c.bf16 %v493_v23, %v491_v30  ;;  %v1209_v8 = vsub.f32 %v232_v5, %v2398_v44  ;;  %v591_v1 = vsub.bf16 1065369472, %v559_v49 }
 0x11d   :  { %v412_v21 = vpack.c.bf16 %v378_v4, %v376_v12  ;;  %v1276_v41 = vand.u32 2147450879, %v1244_v37  ;;  %v526_v55 = vpack.c.bf16 %v492_v14, %v490_v32  ;;  %v201_v34 = vmul.f32 0.0625, %v169_v28 }
 0x11e   :  { %v655_v60 = vand.u32 2147450879, %v527_v39  ;;  %v1243_v13 = vpack.c.bf16 %v1209_v8, %v1207_v26  ;;  %v202_v15 = vmul.f32 0.0625, %v170_v38  ;;  %v3029_v7 = vmax.bf16 %v3435_v6, %v591_v1 }
 0x11f   :  { %v558_v62 = vand.u32 2147450879, %v412_v21  ;;  %v1308_v56 = vsub.bf16 1065369472, %v1276_v41  ;;  %v654_v54 = vand.u32 2147450879, %v526_v55  ;;  %v233_v48 = vfloor.f32 %v201_v34 }
 0x120   :  { %v687_v27 = vsub.bf16 1065369472, %v655_v60  ;;  %v1275_v12 = vand.u32 2147450879, %v1243_v13  ;;  %v234_v23 = vfloor.f32 %v202_v15 }
 0x121   :  { %v590_v30 = vsub.bf16 1065369472, %v558_v62  ;;  %v1340_v5 = vmax.bf16 %v3435_v6, %v1308_v56  ;;  %v686_v4 = vsub.bf16 1065369472, %v654_v54  ;;  %v265_v49 = vmul.f32 16.0, %v233_v48 }
 0x122   :  { %v381_v28 = vsub.f32 %v233_v48, %v2392_v42  ;;  %v719_v32 = vmax.bf16 %v3435_v6, %v687_v27  ;;  %v1307_v14 = vsub.bf16 1065369472, %v1275_v12  ;;  %v266_v26 = vmul.f32 16.0, %v234_v23 }
 0x123   :  { %v3035_v37 = vmax.bf16 %v3435_v6, %v590_v30  ;;  %v718_v41 = vmax.bf16 %v3435_v6, %v686_v4  ;;  %v3038_v34 = vsub.f32 %v137_v20, %v265_v49  ;;  %v383_v13 = vsub.f32 %v234_v23, %v2392_v42 }
 0x124   :  { %v1212_v62 = vsub.f32 %v233_v48, %v2401_v45  ;;  %v751_v60 = vmul.bf16 %v719_v32, %v3029_v7  ;;  %v1372_v55 = vmul.bf16 %v1340_v5, %v719_v32  ;;  %v1339_v15 = vmax.bf16 %v3435_v6, %v1307_v14 }
 0x125   :  { %v3044_v39 = vsub.f32 %v138_v58, %v266_v26  ;;  %v750_v21 = vmul.bf16 %v718_v41, %v3035_v37  ;;  %v415_v8 = vpack.c.bf16 %v383_v13, %v381_v28  ;;  %v495_v38 = vsub.f32 %v3038_v34, %v2395_v43 }
 0x126   :  { %v1214_v20 = vsub.f32 %v234_v23, %v2401_v45  ;;  %830 = vmatprep.subr.bf16.mxu1 %v751_v60  ;;  %1451 = vmatprep.subr.bf16.mxu0 %v1372_v55  ;;  %v1371_v42 = vmul.bf16 %v1339_v15, %v718_v41  ;;  %v380_v56 = vsub.f32 %v233_v48, %v2404_v46  ;;  %v3469_v54 = vand.u32 2147450879, %v2941_v33 }
 0x127   :  { %v497_v1 = vsub.f32 %v3044_v39, %v2395_v43  ;;  %831 = vmatpush1.bf16.msra.mxu1 %v750_v21  ;;  %v561_v27 = vand.u32 2147450879, %v415_v8  ;;  %v382_v12 = vsub.f32 %v234_v23, %v2404_v46  ;;  %v494_v5 = vsub.f32 %v3038_v34, %v2407_v47 }
 0x128   :  { %v1673_v58 = vsub.bf16 1065369472, %v3469_v54  ;;  %v1246_v30 = vpack.c.bf16 %v1214_v20, %v1212_v62  ;;  %1452 = vmatpush1.bf16.msra.mxu0 %v1371_v42  ;;  %v496_v49 = vsub.f32 %v3044_v39, %v2407_v47  ;;  %v1211_v43 = vsub.f32 %v233_v48, %v2398_v44 }
 0x129   :  { %v529_v4 = vpack.c.bf16 %v497_v1, %v495_v38  ;;  %v1213_v28 = vsub.f32 %v234_v23, %v2398_v44  ;;  %v593_v32 = vsub.bf16 1065369472, %v561_v27  ;;  %v414_v14 = vpack.c.bf16 %v382_v12, %v380_v56 }
 0x12a   :  { %v1278_v33 = vand.u32 2147450879, %v1246_v30  ;;  %v1705_v26 = vmax.bf16 %v3435_v6, %v1673_v58  ;;  %v528_v13 = vpack.c.bf16 %v496_v49, %v494_v5  ;;  %v1551_v62 = vsub.f32 %v2462_v35, %v2401_v45 }
 0x12b   :  { %v657_v41 = vand.u32 2147450879, %v529_v4  ;;  %v1245_v46 = vpack.c.bf16 %v1213_v28, %v1211_v43  ;;  %v3066_v60 = vmax.bf16 %v3435_v6, %v593_v32  ;;  %v560_v47 = vand.u32 2147450879, %v414_v14 }
 0x12c   :  { %v1310_v55 = vsub.bf16 1065369472, %v1278_v33  ;;  %v1737_v48 = vmul.bf16 %v1705_v26, %v2433_v40  ;;  %v656_v23 = vand.u32 2147450879, %v528_v13  ;;  %v3470_v8 = vsub.f32 %v2456_v24, %v2401_v45  ;;  %v2072_v13 = vld [vmem:[#allocation5] ss:$8 sps:$4 sm:$0xff]  }
 0x12d   :  { %v689_v15 = vsub.bf16 1065369472, %v657_v41  ;;  %v1277_v21 = vand.u32 2147450879, %v1245_v46  ;;  %v592_v42 = vsub.bf16 1065369472, %v560_v47  ;;  %v1548_v1 = vsub.f32 %v2456_v24, %v2398_v44 }
 0x12e   :  { %v1611_v38 = vpack.c.bf16 %v1551_v62, %v3470_v8  ;;  %v1342_v20 = vmax.bf16 %v3435_v6, %v1310_v55  ;;  %v1550_v56 = vsub.f32 %v2462_v35, %v2398_v44  ;;  %v688_v58 = vsub.bf16 1065369472, %v656_v23  ;;  %v2075_v62 = vld [vmem:[#allocation7] ss:$8 sps:$4 sm:$0xff]  }
 0x12f   :  { %v721_v54 = vmax.bf16 %v3435_v6, %v689_v15  ;;  %v1309_v40 = vsub.bf16 1065369472, %v1277_v21  ;;  %v3079_v30 = vmax.bf16 %v3435_v6, %v592_v42  ;;  %v1553_v5 = vsub.f32 %v2483_v29, %v2401_v45 }
 0x130   :  { %v1643_v27 = vand.u32 2147450879, %v1611_v38  ;;  %v1610_v12 = vpack.c.bf16 %v1550_v56, %v1548_v1  ;;  %v1555_v4 = vsub.f32 %v2487_v16, %v2401_v45  ;;  %v720_v35 = vmax.bf16 %v3435_v6, %v688_v58  ;;  %v2078_v1 = vld [vmem:[#allocation5 + $0x14] ss:$8 sps:$4 sm:$0xff]  }
 0x131   :  { %v753_v24 = vmul.bf16 %v721_v54, %v3066_v60  ;;  %v1374_v49 = vmul.bf16 %v1342_v20, %v721_v54  ;;  %v1341_v43 = vmax.bf16 %v3435_v6, %v1309_v40  ;;  %v1552_v14 = vsub.f32 %v2483_v29, %v2398_v44  ;;  %v2081_v56 = vld [vmem:[#allocation7 + $0x14] ss:$8 sps:$4 sm:$0xff]  }
 0x132   :  { %v1675_v28 = vsub.bf16 1065369472, %v1643_v27  ;;  %v1642_v32 = vand.u32 2147450879, %v1610_v12  ;;  %v1613_v33 = vpack.c.bf16 %v1555_v4, %v1553_v5  ;;  %v752_v26 = vmul.bf16 %v720_v35, %v3079_v30 }
 0x133   :  { %832 = vmatprep.subr.bf16.mxu1 %v753_v24  ;;  %1453 = vmatprep.subr.bf16.mxu0 %v1374_v49  ;;  %v1373_v41 = vmul.bf16 %v1341_v43, %v720_v35  ;;  %v1554_v46 = vsub.f32 %v2487_v16, %v2398_v44  ;;  %v1557_v23 = vsub.f32 %v2537_v63, %v2401_v45 }
 0x134   :  { %v1707_v55 = vmax.bf16 %v3435_v6, %v1675_v28  ;;  %v1674_v47 = vsub.bf16 1065369472, %v1642_v32  ;;  %v1645_v15 = vand.u32 2147450879, %v1613_v33  ;;  %833 = vmatpush1.bf16.msra.mxu1 %v752_v26  ;;  %v1559_v21 = vsub.f32 %v2546_v17, %v2401_v45  ;;  %v2080_v32 = vld [vmem:[#allocation5 + $0x10] ss:$8 sps:$4 sm:$0xff]  }
 0x135   :  { %1454 = vmatpush1.bf16.msra.mxu0 %v1373_v41  ;;  %v1612_v29 = vpack.c.bf16 %v1554_v46, %v1552_v14  ;;  %v1556_v8 = vsub.f32 %v2537_v63, %v2398_v44  ;;  %2000 = vmatprep.subr.bf16.mxu1 %v1737_v48  ;;  %v1558_v42 = vsub.f32 %v2546_v17, %v2398_v44  ;;  %v2083_v33 = vld [vmem:[#allocation7 + $0x10] ss:$8 sps:$4 sm:$0xff]  }
 0x136   :  { %1816 = vmatprep.subr.bf16.mxu0 %v1737_v48  ;;  %v1739_v16 = vmul.bf16 %v1707_v55, %v2475_v3  ;;  %v1706_v38 = vmax.bf16 %v3435_v6, %v1674_v47  ;;  %v1677_v20 = vsub.bf16 1065369472, %v1645_v15  ;;  %v1615_v58 = vpack.c.bf16 %v1559_v21, %v1557_v23  ;;  %v2087_v21 = vld [vmem:[#allocation7 + $0x24] ss:$8 sps:$4 sm:$0xff]  }
 0x137   :  { %v1644_v54 = vand.u32 2147450879, %v1612_v29  ;;  %v1561_v40 = vsub.f32 %v2584_v51, %v2401_v45  ;;  %v1563_v63 = vsub.f32 %v2586_v52, %v2401_v45  ;;  %835 = vmatmul.mubr.bf16.vlgmr.msra.gmra.mrb[0].mxu1 %v2072_v13  ;;  %v1614_v27 = vpack.c.bf16 %v1558_v42, %v1556_v8 }
 0x138   :  { %1456 = vmatmul.mubr.bf16.vlgmr.msra.gmra.mrb[0].mxu0 %v2075_v62  ;;  %v1738_v3 = vmul.bf16 %v1706_v38, %v2479_v31  ;;  %v1709_v48 = vmax.bf16 %v3435_v6, %v1677_v20  ;;  %2016 = vmatpush1.bf16.msra.mxu1 %v2645_v59  ;;  %v1647_v12 = vand.u32 2147450879, %v1615_v58  ;;  %v1560_v4 = vsub.f32 %v2584_v51, %v2398_v44 }
 0x139   :  { %1817 = vmatpush1.bf16.msra.mxu0 %v2645_v59  ;;  %v1676_v17 = vsub.bf16 1065369472, %v1644_v54  ;;  %v1617_v5 = vpack.c.bf16 %v1563_v63, %v1561_v40  ;;  %2001 = vmatprep.subr.bf16.mxu1 %v1739_v16  ;;  %v1646_v49 = vand.u32 2147450879, %v1614_v27  ;;  %v1562_v31 = vsub.f32 %v2586_v52, %v2398_v44 }
 0x13a   :  { %1818 = vmatprep.subr.bf16.mxu0 %v1739_v16  ;;  %v1741_v24 = vmul.bf16 %v1709_v48, %v2515_v36  ;;  %v1565_v35 = vsub.f32 %v2617_v22, %v2401_v45  ;;  %844 = vmatprep.mubr.bf16.mxu1 %v2078_v1  ;;  %v1679_v43 = vsub.bf16 1065369472, %v1647_v12  ;;  %v1567_v51 = vsub.f32 %v2625_v53, %v2401_v45  ;;  %v2086_v48 = vld [vmem:[#allocation5 + $0x20] ss:$8 sps:$4 sm:$0xff]  }
 0x13b   :  { %1465 = vmatprep.mubr.bf16.mxu0 %v2081_v56  ;;  %v1708_v59 = vmax.bf16 %v3435_v6, %v1676_v17  ;;  %v1649_v28 = vand.u32 2147450879, %v1617_v5  ;;  %v1678_v14 = vsub.bf16 1065369472, %v1646_v49  ;;  %v1616_v36 = vpack.c.bf16 %v1562_v31, %v1560_v4  ;;  %v2089_v17 = vld [vmem:[#allocation7 + $0x20] ss:$8 sps:$4 sm:$0xff]  }
 0x13c   :  { %v1564_v26 = vsub.f32 %v2617_v22, %v2398_v44  ;;  %v1566_v52 = vsub.f32 %v2625_v53, %v2398_v44  ;;  %2017 = vmatpush1.bf16.msra.mxu1 %v1738_v3  ;;  %v1711_v13 = vmax.bf16 %v3435_v6, %v1679_v43  ;;  %v1619_v62 = vpack.c.bf16 %v1567_v51, %v1565_v35  ;;  %v2084_v53 = vld [vmem:[#allocation5 + $0x24] ss:$8 sps:$4 sm:$0xff]  }
 0x13d   :  { %1819 = vmatpush1.bf16.msra.mxu0 %v1738_v3  ;;  %v1740_v41 = vmul.bf16 %v1708_v59, %v2525_v19  ;;  %v1681_v46 = vsub.bf16 1065369472, %v1649_v28  ;;  %2002 = vmatprep.subr.bf16.mxu1 %v1741_v24  ;;  %v1710_v55 = vmax.bf16 %v3435_v6, %v1678_v14  ;;  %v1648_v47 = vand.u32 2147450879, %v1616_v36  ;;  %v3472_v59 = vld [vmem:[#allocation28_spill] sm:$0xff] }
 0x13e   :  { %1820 = vmatprep.subr.bf16.mxu0 %v1741_v24  ;;  %v1618_v15 = vpack.c.bf16 %v1566_v52, %v1564_v26  ;;  %v1569_v22 = vsub.f32 %v2669_v25, %v2401_v45  ;;  %v1743_v23 = vmul.bf16 %v1711_v13, %v2560_v57  ;;  %v1651_v19 = vand.u32 2147450879, %v1619_v62  ;;  %v3471_v24 = vld [vmem:[#allocation22_spill] sm:$0xff] }
 0x13f   :  { %v1713_v29 = vmax.bf16 %v3435_v6, %v1681_v46  ;;  %v1571_v8 = vsub.f32 %v2671_v61, %v2401_v45  ;;  %845 = vmatmul.mubr.bf16.gmra.mrb[4].mxu1 %v2080_v32  ;;  %v1742_v16 = vmul.bf16 %v1710_v55, %v2564_v2  ;;  %v1680_v38 = vsub.bf16 1065369472, %v1648_v47  ;;  %v3474_v32 = vld [vmem:[#allocation29_spill] sm:$0xff]  ;;  %v3475_v55 = vld [vmem:[#allocation32_spill] sm:$0xff] }
 0x140   :  { %1466 = vmatmul.mubr.bf16.gmra.mrb[4].mxu0 %v2083_v33  ;;  %v1650_v20 = vand.u32 2147450879, %v1618_v15  ;;  %v1568_v42 = vsub.f32 %v2669_v25, %v2398_v44  ;;  %2018 = vmatpush1.bf16.msra.mxu1 %v1740_v41  ;;  %v1683_v1 = vsub.bf16 1065369472, %v1651_v19  ;;  %v1570_v54 = vsub.f32 %v2671_v61, %v2398_v44  ;;  %v2090_v14 = vld [vmem:[#allocation5 + $0x34] ss:$8 sps:$4 sm:$0xff]  }
 0x141   :  { %1821 = vmatpush1.bf16.msra.mxu0 %v1740_v41  ;;  %v1745_v57 = vmul.bf16 %v1713_v29, %v2605_v10  ;;  %v1621_v56 = vpack.c.bf16 %v1571_v8, %v1569_v22  ;;  %2003 = vmatprep.subr.bf16.mxu1 %v1743_v23  ;;  %v1712_v58 = vmax.bf16 %v3435_v6, %v1680_v38  ;;  %v2093_v36 = vld [vmem:[#allocation7 + $0x34] ss:$8 sps:$4 sm:$0xff]   ;;  %v3476_v15 = vld [vmem:[#allocation24_spill] sm:$0xff] }
 0x142   :  { %1822 = vmatprep.subr.bf16.mxu0 %v1743_v23  ;;  %v1682_v40 = vsub.bf16 1065369472, %v1650_v20  ;;  %v1573_v2 = vsub.f32 %v2706_v11, %v2401_v45  ;;  %v1575_v25 = vsub.f32 %v2711_v50, %v2401_v45  ;;  %854 = vmatprep.mubr.bf16.mxu1 %v2084_v53  ;;  %v1715_v10 = vmax.bf16 %v3435_v6, %v1683_v1 }
 0x143   :  { %1475 = vmatprep.mubr.bf16.mxu0 %v2087_v21  ;;  %v1653_v63 = vand.u32 2147450879, %v1621_v56  ;;  %v1620_v3 = vpack.c.bf16 %v1570_v54, %v1568_v42  ;;  %v1572_v61 = vsub.f32 %v2706_v11, %v2398_v44  ;;  %v1744_v27 = vmul.bf16 %v1712_v58, %v2612_v0  ;;  %v3473_v11 = vld [vmem:[#allocation23_spill] sm:$0xff]  ;;  %v2092_v42 = vld [vmem:[#allocation5 + $0x30] ss:$8 sps:$4 sm:$0xff]  }
 0x144   :  { %v1714_v12 = vmax.bf16 %v3435_v6, %v1682_v40  ;;  %v1623_v5 = vpack.c.bf16 %v1575_v25, %v1573_v2  ;;  %v1574_v4 = vsub.f32 %v2711_v50, %v2398_v44  ;;  %2019 = vmatpush1.bf16.msra.mxu1 %v1742_v16  ;;  %v1747_v49 = vmul.bf16 %v1715_v10, %v3471_v24  ;;  %v2095_v56 = vld [vmem:[#allocation7 + $0x30] ss:$8 sps:$4 sm:$0xff]   ;;  %v3478_v10 = vld [vmem:[#allocation35_spill] sm:$0xff] }
 0x145   :  { %1823 = vmatpush1.bf16.msra.mxu0 %v1742_v16  ;;  %v1685_v31 = vsub.bf16 1065369472, %v1653_v63  ;;  %v1652_v35 = vand.u32 2147450879, %v1620_v3  ;;  %v1577_v43 = vsub.f32 %v3472_v59, %v2401_v45  ;;  %2004 = vmatprep.subr.bf16.mxu1 %v1745_v57  ;;  %v1579_v33 = vsub.f32 %v3474_v32, %v2401_v45  ;;  %v3479_v3 = vld [vmem:[#allocation36_spill] sm:$0xff] }
 0x146   :  { %1824 = vmatprep.subr.bf16.mxu0 %v1745_v57  ;;  %v1746_v0 = vmul.bf16 %v1714_v12, %v3473_v11  ;;  %v1655_v28 = vand.u32 2147450879, %v1623_v5  ;;  %v1622_v51 = vpack.c.bf16 %v1574_v4, %v1572_v61  ;;  %v1576_v52 = vsub.f32 %v3472_v59, %v2398_v44  ;;  %v3477_v57 = vld [vmem:[#allocation25_spill] sm:$0xff]  ;;  %v3481_v5 = vld [vmem:[#allocation27_spill] sm:$0xff] }
 0x147   :  { %v1717_v50 = vmax.bf16 %v3435_v6, %v1685_v31  ;;  %v1684_v26 = vsub.bf16 1065369472, %v1652_v35  ;;  %v1578_v41 = vsub.f32 %v3474_v32, %v2398_v44  ;;  %855 = vmatmul.mubr.bf16.gmra.mrb[8].mxu1 %v2086_v48  ;;  %v1625_v62 = vpack.c.bf16 %v1579_v33, %v1577_v43  ;;  %v2098_v35 = vld [vmem:[#allocation8 + $0x4] ss:$8 sps:$4 sm:$0xff]   ;;  %v3483_v32 = vld [vmem:[#allocation30_spill] sm:$0xff] }
 0x148   :  { %1476 = vmatmul.mubr.bf16.gmra.mrb[8].mxu0 %v2089_v17  ;;  %v1687_v13 = vsub.bf16 1065369472, %v1655_v28  ;;  %v1654_v46 = vand.u32 2147450879, %v1622_v51  ;;  %v1581_v47 = vsub.f32 %v3475_v55, %v2401_v45  ;;  %2020 = vmatpush1.bf16.msra.mxu1 %v1744_v27  ;;  %v1583_v8 = vsub.f32 %v2798_v9, %v2401_v45  ;;  %v2101_v59 = vld [vmem:[#allocation8 + $0x24] ss:$8 sps:$4 sm:$0xff]  }
 0x149   :  { %1825 = vmatpush1.bf16.msra.mxu0 %v1744_v27  ;;  %v1749_v22 = vmul.bf16 %v1717_v50, %v3476_v15  ;;  %v1716_v23 = vmax.bf16 %v3435_v6, %v1684_v26  ;;  %v1624_v53 = vpack.c.bf16 %v1578_v41, %v1576_v52  ;;  %2005 = vmatprep.subr.bf16.mxu1 %v1747_v49  ;;  %v1657_v19 = vand.u32 2147450879, %v1625_v62  ;;  %v3482_v28 = vld [vmem:[#allocation39_spill] sm:$0xff] }
 0x14a   :  { %1826 = vmatprep.subr.bf16.mxu0 %v1747_v49  ;;  %v1719_v29 = vmax.bf16 %v3435_v6, %v1687_v13  ;;  %v1686_v21 = vsub.bf16 1065369472, %v1654_v46  ;;  %860 = vmatprep.mubr.bf16.mxu1 %v2090_v14  ;;  %v1580_v38 = vsub.f32 %v3475_v55, %v2398_v44  ;;  %v1582_v20 = vsub.f32 %v2798_v9, %v2398_v44  ;;  %v3480_v9 = vld [vmem:[#allocation26_spill] sm:$0xff] }
 0x14b   :  { %1481 = vmatprep.mubr.bf16.mxu0 %v2093_v36  ;;  %v1656_v16 = vand.u32 2147450879, %v1624_v53  ;;  %v1748_v1 = vmul.bf16 %v1716_v23, %v3477_v57  ;;  %v1689_v58 = vsub.bf16 1065369472, %v1657_v19  ;;  %v1627_v40 = vpack.c.bf16 %v1583_v8, %v1581_v47  ;;  %v3484_v47 = vld [vmem:[#allocation31_spill] sm:$0xff]  ;;  %v3485_v23 = vld [vmem:[#allocation42_spill] sm:$0xff] }
 0x14c   :  { %v1718_v54 = vmax.bf16 %v3435_v6, %v1686_v21  ;;  %2021 = vmatpush1.bf16.msra.mxu1 %v1746_v0  ;;  %v1626_v25 = vpack.c.bf16 %v1582_v20, %v1580_v38  ;;  %v1585_v63 = vsub.f32 %v3478_v10, %v2401_v45  ;;  %v1587_v61 = vsub.f32 %v3479_v3, %v2401_v45 }
 0x14d   :  { %1827 = vmatpush1.bf16.msra.mxu0 %v1746_v0  ;;  %v1688_v2 = vsub.bf16 1065369472, %v1656_v16  ;;  %2006 = vmatprep.subr.bf16.mxu1 %v1749_v22  ;;  %v1751_v48 = vmul.bf16 %v1719_v29, %v3480_v9  ;;  %v1721_v27 = vmax.bf16 %v3435_v6, %v1689_v58  ;;  %v1659_v17 = vand.u32 2147450879, %v1627_v40  ;;  %v3486_v29 = vld [vmem:[#allocation43_spill] sm:$0xff]  ;;  %v3489_v40 = vld [vmem:[#allocation46_spill] sm:$0xff] }
 0x14e   :  { %1828 = vmatprep.subr.bf16.mxu0 %v1749_v22  ;;  %v1584_v12 = vsub.f32 %v3478_v10, %v2398_v44  ;;  %v1750_v4 = vmul.bf16 %v1718_v54, %v3481_v5  ;;  %v1658_v24 = vand.u32 2147450879, %v1626_v25  ;;  %v1629_v49 = vpack.c.bf16 %v1587_v61, %v1585_v63  ;;  %v3491_v9 = vld [vmem:[#allocation37_spill] sm:$0xff] }
 0x14f   :  { %v1586_v31 = vsub.f32 %v3479_v3, %v2398_v44  ;;  %861 = vmatmul.mubr.bf16.gmra.mrb[12].mxu1 %v2092_v42  ;;  %v1720_v43 = vmax.bf16 %v3435_v6, %v1688_v2  ;;  %v1691_v11 = vsub.bf16 1065369472, %v1659_v17  ;;  %v1589_v0 = vsub.f32 %v2871_v18, %v2401_v45  ;;  %v3490_v3 = vld [vmem:[#allocation47_spill] sm:$0xff] }
 0x150   :  { %1482 = vmatmul.mubr.bf16.gmra.mrb[12].mxu0 %v2095_v56  ;;  %v1591_v51 = vsub.f32 %v3482_v28, %v2401_v45  ;;  %2022 = vmatpush1.bf16.msra.mxu1 %v1748_v1  ;;  %v1753_v33 = vmul.bf16 %v1721_v27, %v3483_v32  ;;  %v1690_v14 = vsub.bf16 1065369472, %v1658_v24  ;;  %v1661_v50 = vand.u32 2147450879, %v1629_v49  ;;  %v3488_v56 = vld [vmem:[#allocation34_spill] sm:$0xff] }
 0x151   :  { %1829 = vmatpush1.bf16.msra.mxu0 %v1748_v1  ;;  %v1628_v36 = vpack.c.bf16 %v1586_v31, %v1584_v12  ;;  %2007 = vmatprep.subr.bf16.mxu1 %v1751_v48  ;;  %v1723_v26 = vmax.bf16 %v3435_v6, %v1691_v11  ;;  %v1588_v41 = vsub.f32 %v2871_v18, %v2398_v44  ;;  %v3487_v18 = vld [vmem:[#allocation33_spill] sm:$0xff] }
 0x152   :  { %1830 = vmatprep.subr.bf16.mxu0 %v1751_v48  ;;  %v1631_v52 = vpack.c.bf16 %v1591_v51, %v1589_v0  ;;  %v1722_v13 = vmax.bf16 %v3435_v6, %v1690_v14  ;;  %v1693_v46 = vsub.bf16 1065369472, %v1661_v50  ;;  %v1590_v55 = vsub.f32 %v3482_v28, %v2398_v44  ;;  %1848 = vmatprep.mubr.bf16.mxu0 %v2098_v35  ;;  %v3492_v35 = vld [vmem:[#allocation50_spill] sm:$0xff] }
 0x153   :  { %v1660_v62 = vand.u32 2147450879, %v1628_v36  ;;  %1868 = vmatprep.mubr.bf16.mxu1 %v2101_v59  ;;  %v1752_v15 = vmul.bf16 %v1720_v43, %v3484_v47  ;;  %v1593_v53 = vsub.f32 %v3485_v23, %v2401_v45  ;;  %v1595_v21 = vsub.f32 %v3486_v29, %v2401_v45  ;;  %v3493_v43 = vld [vmem:[#allocation51_spill] sm:$0xff]  ;;  %v3494_v0 = vld [vmem:[#allocation38_spill] sm:$0xff] }
 0x154   :  { %v1663_v22 = vand.u32 2147450879, %v1631_v52  ;;  %2023 = vmatpush1.bf16.msra.mxu1 %v1750_v4  ;;  %v1755_v19 = vmul.bf16 %v1723_v26, %v3487_v18  ;;  %v1725_v8 = vmax.bf16 %v3435_v6, %v1693_v46  ;;  %v1630_v38 = vpack.c.bf16 %v1590_v55, %v1588_v41  ;;  %v3495_v52 = vld [vmem:[#allocation40_spill] sm:$0xff] }
 0x155   :  { %1831 = vmatpush1.bf16.msra.mxu0 %v1750_v4  ;;  %v1692_v16 = vsub.bf16 1065369472, %v1660_v62  ;;  %2008 = vmatprep.subr.bf16.mxu1 %v1753_v33  ;;  %v1633_v42 = vpack.c.bf16 %v1595_v21, %v1593_v53  ;;  %v1592_v57 = vsub.f32 %v3485_v23, %v2398_v44  ;;  %v1594_v1 = vsub.f32 %v3486_v29, %v2398_v44 }
 0x156   :  { %1832 = vmatprep.subr.bf16.mxu0 %v1753_v33  ;;  %v1695_v20 = vsub.bf16 1065369472, %v1663_v22  ;;  %v1754_v54 = vmul.bf16 %v1722_v13, %v3488_v56  ;;  %v1662_v58 = vand.u32 2147450879, %v1630_v38  ;;  %v1597_v2 = vsub.f32 %v3489_v40, %v2401_v45  ;;  %v3496_v22 = vld [vmem:[#allocation41_spill] sm:$0xff] }
 0x157   :  { %v1724_v25 = vmax.bf16 %v3435_v6, %v1692_v16  ;;  %v1665_v10 = vand.u32 2147450879, %v1633_v42  ;;  %v1632_v63 = vpack.c.bf16 %v1594_v1, %v1592_v57  ;;  %v1599_v61 = vsub.f32 %v3490_v3, %v2401_v45  ;;  %v3497_v16 = vld [vmem:[#allocation44_spill] sm:$0xff] }
 0x158   :  { %2024 = vmatpush1.bf16.msra.mxu1 %v1752_v15  ;;  %v1757_v48 = vmul.bf16 %v1725_v8, %v3491_v9  ;;  %v1694_v27 = vsub.bf16 1065369472, %v1662_v58  ;;  %v1596_v17 = vsub.f32 %v3489_v40, %v2398_v44  ;;  %v1598_v12 = vsub.f32 %v3490_v3, %v2398_v44 }
 0x159   :  { %1833 = vmatpush1.bf16.msra.mxu0 %v1752_v15  ;;  %2009 = vmatprep.subr.bf16.mxu1 %v1755_v19  ;;  %v1727_v5 = vmax.bf16 %v3435_v6, %v1695_v20  ;;  %v1697_v4 = vsub.bf16 1065369472, %v1665_v10  ;;  %v1664_v24 = vand.u32 2147450879, %v1632_v63  ;;  %v1635_v49 = vpack.c.bf16 %v1599_v61, %v1597_v2  ;;  %v3500_v2 = vld [vmem:[#allocation48_spill] sm:$0xff] }
 0x15a   :  { %1834 = vmatprep.subr.bf16.mxu0 %v1755_v19  ;;  %v1634_v31 = vpack.c.bf16 %v1598_v12, %v1596_v17  ;;  %v1601_v59 = vsub.f32 %v3492_v35, %v2401_v45  ;;  %v1603_v11 = vsub.f32 %v3493_v43, %v2401_v45  ;;  %v1756_v28 = vmul.bf16 %v1724_v25, %v3494_v0 }
 0x15b   :  { %v1726_v51 = vmax.bf16 %v3435_v6, %v1694_v27  ;;  %v1667_v32 = vand.u32 2147450879, %v1635_v49  ;;  %v1600_v33 = vsub.f32 %v3492_v35, %v2398_v44  ;;  %v1696_v14 = vsub.bf16 1065369472, %v1664_v24  ;;  %v2099_v35 = vld [vmem:[#allocation8 + $0x20] ss:$8 sps:$4 sm:$0xff]  }
 0x15c   :  { %2025 = vmatpush1.bf16.msra.mxu1 %v1754_v54  ;;  %v1666_v50 = vand.u32 2147450879, %v1634_v31  ;;  %v1637_v36 = vpack.c.bf16 %v1603_v11, %v1601_v59  ;;  %v1602_v26 = vsub.f32 %v3493_v43, %v2398_v44  ;;  %v1759_v41 = vmul.bf16 %v1727_v5, %v3495_v52  ;;  %v2104_v59 = vld [vmem:[#allocation8 + $0x34] ss:$8 sps:$4 sm:$0xff]   ;;  %v2107_v43 = vld [vmem:[#allocation8 + $0x30] ss:$8 sps:$4 sm:$0xff]  }
 0x15d   :  { %1835 = vmatpush1.bf16.msra.mxu0 %v1754_v54  ;;  %2010 = vmatprep.subr.bf16.mxu1 %v1757_v48  ;;  %v1729_v13 = vmax.bf16 %v3435_v6, %v1697_v4  ;;  %v1699_v46 = vsub.bf16 1065369472, %v1667_v32  ;;  %v1605_v62 = vsub.f32 %v3038_v34, %v2401_v45  ;;  %v1607_v15 = vsub.f32 %v3044_v39, %v2401_v45 }
 0x15e   :  { %1836 = vmatprep.subr.bf16.mxu0 %v1757_v48  ;;  %v1669_v55 = vand.u32 2147450879, %v1637_v36  ;;  %v1636_v47 = vpack.c.bf16 %v1602_v26, %v1600_v33  ;;  %v1758_v23 = vmul.bf16 %v1726_v51, %v3496_v22  ;;  %v1604_v53 = vsub.f32 %v3038_v34, %v2398_v44  ;;  %v3498_v34 = vld [vmem:[#allocation20_spill] sm:$0xff]  ;;  %v3501_v48 = vld [vmem:[#allocation49_spill] sm:$0xff] }
 0x15f   :  { %v1606_v29 = vsub.f32 %v3044_v39, %v2398_v44  ;;  %v1728_v21 = vmax.bf16 %v3435_v6, %v1696_v14  ;;  %v1698_v18 = vsub.bf16 1065369472, %v1666_v50  ;;  %v1639_v8 = vpack.c.bf16 %v1607_v15, %v1605_v62  ;;  %v3499_v39 = vld [vmem:[#allocation45_spill] sm:$0xff] }
 0x160   :  { %2026 = vmatpush1.bf16.msra.mxu1 %v1756_v28  ;;  %v1668_v19 = vand.u32 2147450879, %v1636_v47  ;;  %v1761_v38 = vmul.bf16 %v1729_v13, %v3497_v16  ;;  %v1731_v45 = vmax.bf16 %v3435_v6, %v1699_v46  ;;  %v1701_v20 = vsub.bf16 1065369472, %v1669_v55 }
 0x161   :  { %1837 = vmatpush1.bf16.msra.mxu0 %v1756_v28  ;;  %2011 = vmatprep.subr.bf16.mxu1 %v1759_v41  ;;  %v1638_v42 = vpack.c.bf16 %v1606_v29, %v1604_v53  ;;  %v1671_v57 = vand.u32 2147450879, %v1639_v8  ;;  %v3248_v1 = vmul.f32 2.9452431, %v3498_v34  ;;  %v1760_v56 = vmul.bf16 %v1728_v21, %v3499_v39 }
 0x162   :  { %1838 = vmatprep.subr.bf16.mxu0 %v1759_v41  ;;  %v1730_v54 = vmax.bf16 %v3435_v6, %v1698_v18  ;;  %v1700_v58 = vsub.bf16 1065369472, %v1668_v19  ;;  %v1763_v25 = vmul.bf16 %v1731_v45, %v3500_v2  ;;  %v1733_v10 = vmax.bf16 %v3435_v6, %v1701_v20 }
 0x163   :  { %v1670_v44 = vand.u32 2147450879, %v1638_v42  ;;  %v1703_v40 = vsub.bf16 1065369472, %v1671_v57  ;;  %v875_v61 = vand.u32 2139095040, %v3248_v1  ;;  %vm874_vm7 = vcmp.lt.s32.totalorder %v3248_v1, 0 }
 0x164   :  { %2027 = vmatpush1.bf16.msra.mxu1 %v1758_v23  ;;  %v1762_v27 = vmul.bf16 %v1730_v54, %v3501_v48  ;;  %v1732_v17 = vmax.bf16 %v3435_v6, %v1700_v58  ;;  %v1765_v5 = vmul.bf16 %v1733_v10, %v3029_v7  ;;  %v2102_v7 = vld [vmem:[#allocation8 + $0x14] ss:$8 sps:$4 sm:$0xff]   ;;  %v2237_v28 = vmov 2102212464  }
 0x165   :  { %1839 = vmatpush1.bf16.msra.mxu0 %v1758_v23  ;;  %2012 = vmatprep.subr.bf16.mxu1 %v1761_v38  ;;  %v1702_v63 = vsub.bf16 1065369472, %v1670_v44  ;;  %v1735_v3 = vmax.bf16 %v3435_v6, %v1703_v40  ;;  %v876_v24 = vshrl.u32 %v875_v61, 23  ;;  %v2238_v32 = vmov 920167782  }
 0x166   :  { %1840 = vmatprep.subr.bf16.mxu0 %v1761_v38  ;;  %v1764_v49 = vmul.bf16 %v1732_v17, %v3035_v37  ;;  %v872_v14 = vand.u32 2147483647, %v3248_v1  ;;  %v2239_v26 = vmov 1326507024   ;;  %v2240_v41 = vmov 683565275  }
 0x167   :  { %v1734_v9 = vmax.bf16 %v3435_v6, %v1702_v63  ;;  %v1767_v12 = vmul.bf16 %v1735_v3, %v3066_v60  ;;  %v1976_v31 = vadd.s32 4294967169, %v876_v24  ;;  %v2096_v60 = vld [vmem:[#allocation8] ss:$8 sps:$4 sm:$0xff]   ;;  %v2241_v46 = vmov 2475754826  }
 0x168   :  { %2028 = vmatpush1.bf16.msra.mxu1 %v1760_v56  ;;  %v2242_v47 = vmov 2131351028   ;;  %v879_v29 = vand.u32 8388607, %v872_v14  ;;  %vm873_vm8 = vcmp.le.f32.partialorder %v872_v14, 0.7853982  ;;  %vm964_vm12 = vweird.f32 %v3248_v1 }
 0x169   :  { %1841 = vmatpush1.bf16.msra.mxu0 %v1760_v56  ;;  %2013 = vmatprep.subr.bf16.mxu1 %v1763_v25  ;;  %v1766_v4 = vmul.bf16 %v1734_v9, %v3079_v30  ;;  %v882_v6 = vadd.s32 1, %v1976_v31  ;;  %v2106_v30 = vld [vmem:[#allocation8 + $0x10] ss:$8 sps:$4 sm:$0xff]  }
 0x16a   :  { %1842 = vmatprep.subr.bf16.mxu0 %v1763_v25  ;;  %v880_v38 = vor.u32 8388608, %v879_v29 }
 0x16b   :  { %vm883_vm0 = vcmp.gt.s32.totalorder %v882_v6, 0 }
 0x16c   :  { %2029 = vmatpush1.bf16.msra.mxu1 %v1762_v27  ;;  %v884_v37 = vsel %vm883_vm0, %v882_v6, 0  ;;  %v920_v44 = vshll.u32 %v880_v38, 8  ;;  %v3503_v38 = vld [vmem:[#allocation15_spill] sm:$0xff] }
 0x16d   :  { %1843 = vmatpush1.bf16.msra.mxu0 %v1762_v27  ;;  %2014 = vmatprep.subr.bf16.mxu1 %v1765_v5  ;;  %v886_v11 = vand.u32 31, %v884_v37  ;;  %v885_v50 = vshrl.u32 %v884_v37, 5 }
 0x16e   :  { %1844 = vmatprep.subr.bf16.mxu0 %v1765_v5 }
 0x16f   :  { %v887_v0 = vsub.s32 32, %v886_v11  ;;  %v898_v51 = vshll.u32 %v2237_v28, %v886_v11  ;;  %v901_v36 = vshll.u32 %v2238_v32, %v886_v11  ;;  %v889_v13 = vshll.u32 %v2240_v41, %v886_v11 }
 0x170   :  { %2030 = vmatpush1.bf16.msra.mxu1 %v1764_v49  ;;  %v892_v62 = vshll.u32 %v2241_v46, %v886_v11  ;;  %v895_v22 = vshll.u32 %v2242_v47, %v886_v11  ;;  %vm907_vm1 = vcmp.lt.s32.totalorder %v885_v50, 4  ;;  %vm904_vm2 = vcmp.lt.s32.totalorder %v885_v50, 1 }
 0x171   :  { %1845 = vmatpush1.bf16.msra.mxu0 %v1764_v49  ;;  %2015 = vmatprep.subr.bf16.mxu1 %v1767_v12  ;;  %v899_v33 = vshrl.u32 %v2238_v32, %v887_v0  ;;  %v902_v52 = vshrl.u32 %v2239_v26, %v887_v0  ;;  %v890_v55 = vshrl.u32 %v2241_v46, %v887_v0  ;;  %vm906_vm3 = vcmp.lt.s32.totalorder %v885_v50, 3 }
 0x172   :  { %1846 = vmatprep.subr.bf16.mxu0 %v1767_v12  ;;  %v893_v15 = vshrl.u32 %v2242_v47, %v887_v0  ;;  %v896_v23 = vshrl.u32 %v2237_v28, %v887_v0  ;;  %vm905_vm4 = vcmp.lt.s32.totalorder %v885_v50, 2  ;;  %v888_v40 = vshrl.u32 %v2240_v41, %v887_v0 }
 0x173   :  { %v900_v53 = vor.u32 %v899_v33, %v898_v51  ;;  %v903_v21 = vor.u32 %v902_v52, %v901_v36  ;;  %v891_v18 = vor.u32 %v890_v55, %v889_v13 }
 0x174   :  { %2031 = vmatpush1.bf16.msra.mxu1 %v1766_v4  ;;  %v894_v19 = vor.u32 %v893_v15, %v892_v62  ;;  %v897_v8 = vor.u32 %v896_v23, %v895_v22 }
 0x175   :  { %1847 = vmatpush1.bf16.msra.mxu0 %v1766_v4  ;;  %v913_v16 = vsel %vm907_vm1, %v900_v53, 920167782  ;;  %v917_v45 = vsel %vm907_vm1, %v903_v21, 1326507024  ;;  %v908_v63 = vsel %vm904_vm2, %v888_v40, %v891_v18 }
 0x176   :  { %v912_v20 = vsel %vm904_vm2, %v891_v18, %v894_v19  ;;  %v914_v42 = vsel %vm906_vm3, %v897_v8, %v913_v16  ;;  %v916_v57 = vsel %vm904_vm2, %v894_v19, %v897_v8  ;;  %v918_v34 = vsel %vm906_vm3, %v900_v53, %v917_v45 }
 0x177   :  { %1869 = vmatmul.mubr.bf16.vlgmr.msra.gmra.mrb[16].mxu1 %v2099_v35  ;;  %v915_v39 = vsel %vm905_vm4, %v912_v20, %v914_v42  ;;  %v919_v56 = vsel %vm905_vm4, %v916_v57, %v918_v34  ;;  %v909_v10 = vsel %vm907_vm1, %v897_v8, 2102212464  ;;  %v3502_v8 = vld [vmem:[#allocation19_spill] sm:$0xff]  ;;  %v3504_v57 = vld [vmem:[#allocation21_spill] sm:$0xff] }
 0x178   :  { %1849 = vmatmul.mubr.bf16.vlgmr.msra.gmra.mrb[0].mxu0 %v2096_v60  ;;  %1874 = vmatprep.mubr.bf16.mxu1 %v2104_v59  ;;  %v3274_v54 = vmul.u32.u64.low %v920_v44, %v915_v39  ;;  %v3275_v58 = vmul.u32.u64.high %v920_v44, %v915_v39, %v3274_v54  ;;  %v3277_v2 = vmul.u32.u64.low %v920_v44, %v919_v56  ;;  %v3278_v25 = vmul.u32.u64.high %v920_v44, %v919_v56, %v3277_v2 }
 0x179   :  { %1858 = vmatprep.mubr.bf16.mxu0 %v2102_v7  ;;  %v910_v3 = vsel %vm906_vm3, %v894_v19, %v909_v10 }
 0x17a   :  { %v911_v61 = vsel %vm905_vm4, %v908_v63, %v910_v3  ;;  %v930_v9 = vadd.s32 1, %v3275_v58  ;;  %vm929_vm5 = vc.u32 %v3278_v25, %v3274_v54  ;;  %v928_v59 = vadd.s32 %v3274_v54, %v3278_v25 }
 0x17b   :  { %v927_v48 = vmul.u32 %v920_v44, %v911_v61  ;;  %v3505_v44 = vld [vmem:[#allocation16_spill] sm:$0xff] }
 0x17c   :  { %v931_v27 = vsel %vm929_vm5, %v930_v9, %v3275_v58 }
 0x17d   :  { %v932_v17 = vadd.s32 %v931_v27, %v927_v48 }
 0x17f   :  { %1875 = vmatmul.mubr.bf16.gmra.mrb[20].mxu1 %v2107_v43  ;;  %v933_v12 = vadd.s32 536870912, %v932_v17 }
 0x180   :  { %1859 = vmatmul.mubr.bf16.gmra.mrb[16].mxu0 %v2106_v30 }
 0x181   :  { %v934_v5 = vshrl.u32 %v933_v12, 30 }
 0x183   :  { %v935_v4 = vshll.u32 %v934_v5, 30  ;;  %v958_v41 = vsub.s32 4, %v934_v5 }
 0x185   :  { %v936_v24 = vsub.s32 %v932_v17, %v935_v4  ;;  %v959_v13 = vsel %vm874_vm7, %v958_v41, %v934_v5 }
 0x186   :  { %v961_v62 = vsel %vm873_vm8, 0, %v959_v13 }
 0x187   :  { %v938_v49 = vsub.s32 0, %v936_v24  ;;  %v965_v47 = vand.u32 3, %v961_v62  ;;  %v1091_v29 = vadd.s32 3, %v961_v62 }
 0x189   :  { %v1977_v31 = vmin.u32 %v938_v49, %v936_v24  ;;  %vm967_vm9 = vcmp.eq.s32.totalorder %v965_v47, 0  ;;  %vm970_vm10 = vcmp.eq.s32.totalorder %v965_v47, 2  ;;  %vm966_vm11 = vcmp.lt.s32.totalorder %v965_v47, 2 }
 0x18a   :  { %v1092_v20 = vand.u32 3, %v1091_v29 }
 0x18b   :  { %v940_v6 = vclz %v1977_v31 }
 0x18c   :  { %vm1094_vm13 = vcmp.eq.s32.totalorder %v1092_v20, 0  ;;  %vm1097_vm14 = vcmp.eq.s32.totalorder %v1092_v20, 2  ;;  %vm1093_vm15 = vcmp.lt.s32.totalorder %v1092_v20, 2 }
 0x18d   :  { %v1978_v60 = vadd.s32 4294967294, %v940_v6 }
 0x18f   :  { %vm1979_vm6 = vcmp.lt.s32.totalorder %v1978_v60, 0 }
 0x190   :  { %v943_v35 = vsel %vm1979_vm6, 0, %v1978_v60 }
 0x191   :  { %v948_v7 = vsub.s32 4294967266, %v943_v35  ;;  %v944_v37 = vsub.s32 32, %v943_v35  ;;  %v945_v43 = vshll.u32 %v936_v24, %v943_v35 }
 0x193   :  { %v949_v30 = vadd.s32 127, %v948_v7  ;;  %v946_v11 = vshrl.u32 %v928_v59, %v944_v37 }
 0x195   :  { %v950_v0 = vshll.u32 %v949_v30, 23  ;;  %v947_v28 = vor.u32 %v946_v11, %v945_v43 }
 0x197   :  { %v951_v51 = vor.u32 4788187, %v950_v0  ;;  %v954_v33 = vcvt.s32.f32 %v947_v28 }
 0x199   :  { %v952_v32 = vand.u32 2147483647, %v951_v51 }
 0x19b   :  { %v955_v50 = vmul.f32 %v954_v33, %v952_v32 }
 0x19d   :  { %v956_v36 = vxor.u32 2147483648, %v955_v50 }
 0x19f   :  { %v957_v26 = vsel %vm874_vm7, %v956_v36, %v955_v50 }
 0x1a0   :  { %v960_v52 = vsel %vm873_vm8, %v3248_v1, %v957_v26 }
 0x1a1   :  { %2108 = vcosq.f32 %v960_v52 }
 0x1a2   :  { %2110 = vsinq.f32 %v960_v52 }
 0x1ab   :  { %v2109_v46 = vpop.eup %2108 }
 0x1ac   :  { %v2111_v55 = vpop.eup %2110  ;;  %v971_v22 = vxor.u32 2147483648, %v2109_v46 }
 0x1ad   :  { %v968_v15 = vxor.u32 2147483648, %v2111_v55 }
 0x1ae   :  { %v972_v53 = vsel %vm970_vm10, %v971_v22, %v2111_v55  ;;  %v1099_v3 = vsel %vm1097_vm14, %v971_v22, %v2111_v55 }
 0x1af   :  { %v969_v23 = vsel %vm967_vm9, %v2109_v46, %v968_v15  ;;  %v1096_v63 = vsel %vm1094_vm13, %v2109_v46, %v968_v15 }
 0x1b0   :  { %v973_v14 = vsel %vm966_vm11, %v969_v23, %v972_v53  ;;  %v1100_v60 = vsel %vm1093_vm15, %v1096_v63, %v1099_v3 }
 0x1b1   :  { %v3295_v21 = vsel %vm964_vm12, nan, %v973_v14  ;;  %v3319_v59 = vsel %vm964_vm12, nan, %v1100_v60 }
 0x1b2   :  { %v979_v16 = vrot.slane %v3295_v21, %v3502_v8  ;;  %v1495_v45 = vrot.slane %v3295_v21, %v3503_v38  ;;  %v983_v34 = vrot.slane %v3295_v21, %v3504_v57  ;;  %v1499_v39 = vrot.slane %v3295_v21, %v3505_v44 }
 0x1b3   :  { %v1106_v0 = vrot.slane %v3319_v59, %v3502_v8  ;;  %v1517_v28 = vrot.slane %v3319_v59, %v3503_v38  ;;  %v1110_v33 = vrot.slane %v3319_v59, %v3504_v57  ;;  %v1521_v1 = vrot.slane %v3319_v59, %v3505_v44 }
 0x1b4   :  { %v989_v54 = vrot.slane %v979_v16, %v3502_v8  ;;  %v1505_v58 = vrot.slane %v1495_v45, %v3503_v38  ;;  %v993_v40 = vrot.slane %v983_v34, %v3502_v8  ;;  %v1509_v2 = vrot.slane %v1499_v39, %v3503_v38 }
 0x1b5   :  { %v1116_v26 = vrot.slane %v1106_v0, %v3502_v8  ;;  %v1527_v52 = vrot.slane %v1517_v28, %v3503_v38  ;;  %v1120_v41 = vrot.slane %v1110_v33, %v3502_v8  ;;  %v1531_v13 = vrot.slane %v1521_v1, %v3503_v38 }
 0x20a   :  { %v3297_v18 = vpop.f32.mrb[0].mxu1 }
 0x20b   :  { %v3299_v19 = vpop.f32.mrb[1].mxu1 }
 0x20c   :  { %v3305_v42 = vpop.f32.mrb[2].mxu1 }
 0x20d   :  { %v3311_v56 = vpop.f32.mrb[3].mxu1 }
 0x212   :  { %v846_v25 = vpop.f32.mrb[4].mxu1 }
 0x213   :  { %v1467_v10 = vpop.f32.mrb[4].mxu0  ;;  %v994_v61 = vmul.f32 %v989_v54, %v846_v25  ;;  %v848_v9 = vpop.f32.mrb[5].mxu1 }
 0x214   :  { %v1510_v48 = vmul.f32 %v1505_v58, %v1467_v10  ;;  %v1469_v27 = vpop.f32.mrb[5].mxu0  ;;  %v995_v17 = vmul.f32 %v993_v40, %v848_v9  ;;  %v850_v12 = vpop.f32.mrb[6].mxu1 }
 0x215   :  { %v1511_v5 = vmul.f32 %v1509_v2, %v1469_v27  ;;  %v1471_v4 = vpop.f32.mrb[6].mxu0  ;;  %v996_v24 = vmul.f32 %v989_v54, %v850_v12  ;;  %v852_v49 = vpop.f32.mrb[7].mxu1 }
 0x216   :  { %v1512_v31 = vmul.f32 %v1505_v58, %v1471_v4  ;;  %v1473_v6 = vpop.f32.mrb[7].mxu0  ;;  %v997_v35 = vmul.f32 %v993_v40, %v852_v49 }
 0x217   :  { %v1513_v7 = vmul.f32 %v1509_v2, %v1473_v6 }
 0x21a   :  { %v856_v37 = vpop.f32.mrb[8].mxu1 }
 0x21b   :  { %v1477_v30 = vpop.f32.mrb[8].mxu0  ;;  %v857_v43 = vpop.f32.mrb[9].mxu1 }
 0x21c   :  { %v1478_v11 = vpop.f32.mrb[9].mxu0  ;;  %v858_v51 = vpop.f32.mrb[10].mxu1 }
 0x21d   :  { %v1479_v32 = vpop.f32.mrb[10].mxu0  ;;  %v859_v50 = vpop.f32.mrb[11].mxu1 }
 0x21e   :  { %v1480_v36 = vpop.f32.mrb[11].mxu0 }
 0x222   :  { %v862_v46 = vpop.f32.mrb[12].mxu1 }
 0x223   :  { %v1483_v62 = vpop.f32.mrb[12].mxu0  ;;  %v1121_v55 = vmul.f32 %v1116_v26, %v862_v46  ;;  %v864_v47 = vpop.f32.mrb[13].mxu1 }
 0x224   :  { %v1532_v15 = vmul.f32 %v1527_v52, %v1483_v62  ;;  %v1485_v22 = vpop.f32.mrb[13].mxu0  ;;  %v1122_v23 = vmul.f32 %v1120_v41, %v864_v47  ;;  %v866_v53 = vpop.f32.mrb[14].mxu1 }
 0x225   :  { %v1533_v14 = vmul.f32 %v1531_v13, %v1485_v22  ;;  %v1487_v29 = vpop.f32.mrb[14].mxu0  ;;  %v1125_v16 = vsub.f32 %v994_v61, %v1121_v55  ;;  %v1123_v45 = vmul.f32 %v1116_v26, %v866_v53  ;;  %v868_v57 = vpop.f32.mrb[15].mxu1 }
 0x226   :  { %v1536_v20 = vsub.f32 %v1510_v48, %v1532_v15  ;;  %v1534_v34 = vmul.f32 %v1527_v52, %v1487_v29  ;;  %v1489_v44 = vpop.f32.mrb[15].mxu0  ;;  %v1126_v39 = vsub.f32 %v995_v17, %v1122_v23  ;;  %v1124_v8 = vmul.f32 %v1120_v41, %v868_v57 }
 0x227   :  { %v1537_v54 = vsub.f32 %v1511_v5, %v1533_v14  ;;  %v1535_v38 = vmul.f32 %v1531_v13, %v1489_v44  ;;  %v1127_v58 = vsub.f32 %v996_v24, %v1123_v45  ;;  %v1129_v2 = vadd.f32 %v1125_v16, %v3297_v18 }
 0x228   :  { %v1538_v40 = vsub.f32 %v1512_v31, %v1534_v34  ;;  %v1128_v25 = vsub.f32 %v997_v35, %v1124_v8  ;;  %v1130_v63 = vadd.f32 %v1126_v39, %v3299_v19  ;;  %v3506_v31 = vld [vmem:[#allocation17_spill] sm:$0xff] }
 0x229   :  { %v1539_v10 = vsub.f32 %v1513_v7, %v1535_v38  ;;  %v2033_v3 = vadd.f32 %v1536_v20, %v1129_v2  ;;  %v1131_v61 = vadd.f32 %v1127_v58, %v3305_v42  ;;  %v1888_v18 = vrot.slane %v3295_v21, %v3506_v31  ;;  %v3507_v42 = vld [vmem:[#allocation18_spill] sm:$0xff] }
 0x22a   :  { %v2037_v9 = vadd.f32 %v1537_v54, %v1130_v63  ;;  %v1132_v48 = vadd.f32 %v1128_v25, %v3311_v56  ;;  %v1910_v6 = vrot.slane %v3319_v59, %v3506_v31  ;;  %v1892_v7 = vrot.slane %v3295_v21, %v3507_v42 }
 0x22b   :  { %v2041_v27 = vadd.f32 %v1538_v40, %v1131_v61  ;;  %v1914_v56 = vrot.slane %v3319_v59, %v3507_v42  ;;  %v1898_v0 = vrot.slane %v1888_v18, %v3506_v31 }
 0x22c   :  { %v2045_v12 = vadd.f32 %v1539_v10, %v1132_v48  ;;  %v1920_v28 = vrot.slane %v1910_v6, %v3506_v31  ;;  %v1902_v51 = vrot.slane %v1892_v7, %v3506_v31 }
 0x22d   :  { %v1924_v32 = vrot.slane %v1914_v56, %v3506_v31 }
 0x24a   :  { %v1870_v4 = vpop.f32.mrb[16].mxu1 }
 0x24b   :  { %v1850_v17 = vpop.f32.mrb[0].mxu0  ;;  %v1871_v24 = vpop.f32.mrb[17].mxu1 }
 0x24c   :  { %v2034_v5 = vadd.f32 %v2033_v3, %v1850_v17  ;;  %v1852_v49 = vpop.f32.mrb[1].mxu0  ;;  %v1872_v35 = vpop.f32.mrb[18].mxu1 }
 0x24d   :  { %v2038_v19 = vadd.f32 %v2037_v9, %v1852_v49  ;;  %v1854_v60 = vpop.f32.mrb[2].mxu0  ;;  %v1873_v43 = vpop.f32.mrb[19].mxu1 }
 0x24e   :  { %v2042_v37 = vadd.f32 %v2041_v27, %v1854_v60  ;;  %v1856_v30 = vpop.f32.mrb[3].mxu0 }
 0x24f   :  { %v2046_v11 = vadd.f32 %v2045_v12, %v1856_v30 }
 0x252   :  { %v1876_v1 = vpop.f32.mrb[20].mxu1 }
 0x253   :  { %v1860_v33 = vpop.f32.mrb[16].mxu0  ;;  %v1925_v36 = vmul.f32 %v1920_v28, %v1876_v1  ;;  %v1878_v26 = vpop.f32.mrb[21].mxu1 }
 0x254   :  { %v1903_v50 = vmul.f32 %v1898_v0, %v1860_v33  ;;  %v1862_v21 = vpop.f32.mrb[17].mxu0  ;;  %v1926_v59 = vmul.f32 %v1924_v32, %v1878_v26  ;;  %v1880_v13 = vpop.f32.mrb[22].mxu1 }
 0x255   :  { %v1904_v52 = vmul.f32 %v1902_v51, %v1862_v21  ;;  %v1864_v41 = vpop.f32.mrb[18].mxu0  ;;  %v1927_v55 = vmul.f32 %v1920_v28, %v1880_v13  ;;  %v1882_v15 = vpop.f32.mrb[23].mxu1 }
 0x256   :  { %v1929_v46 = vsub.f32 %v1903_v50, %v1925_v36  ;;  %v1905_v62 = vmul.f32 %v1898_v0, %v1864_v41  ;;  %v1866_v47 = vpop.f32.mrb[19].mxu0  ;;  %v1928_v53 = vmul.f32 %v1924_v32, %v1882_v15 }
 0x257   :  { %v1930_v22 = vsub.f32 %v1904_v52, %v1926_v59  ;;  %v1906_v23 = vmul.f32 %v1902_v51, %v1866_v47 }
 0x258   :  { %v2035_v14 = vadd.f32 %v2034_v5, %v1929_v46  ;;  %v1931_v29 = vsub.f32 %v1905_v62, %v1927_v55 }
 0x259   :  { %v2039_v16 = vadd.f32 %v2038_v19, %v1930_v22  ;;  %v1932_v45 = vsub.f32 %v1906_v23, %v1928_v53 }
 0x25a   :  { %1945 = vst [vmem:[#allocation10] sm:$0xff] %v2035_v14  ;;  %v2043_v20 = vadd.f32 %v2042_v37, %v1931_v29 }
 0x25b   :  { %1946 = vst [vmem:[#allocation10 + $0x8] sm:$0xff] %v2039_v16  ;;  %v2047_v57 = vadd.f32 %v2046_v11, %v1932_v45 }
 0x25c   :  { %1947 = vst [vmem:[#allocation10 + $0x10] sm:$0xff] %v2043_v20 }
 0x25d   :  { %1948 = vst [vmem:[#allocation10 + $0x18] sm:$0xff] %v2047_v57 }
 0x25e   :  { %2211 = shalt.err (!%p2208_p8)
}
 0x25f   :  { %s2212_s1 = scalar_lea.hbm %s3365_s4, 512 }
 0x260   :  { %p2213_p9 = scmp.ne.s32.totalorder %s3365_s4, %s2212_s1  ;;  %p2216_p10 = scmp.lt.u32.totalorder %s2212_s1, %s3365_s4 }
 0x262   :  { %p2218_p11 = pnand %p2216_p10, %p2213_p9 }
 0x264   :  { %2221 = shalt.err (!%p2218_p11)
}
 0x265   :  { %s2244_s18 = smov 256   ;;  %s2245_s19 = smov 16  }
 0x266   :  { %1960 = dma.vmem_to_hbm [thread:$0]  %s1955_s25, 512, %s3365_s4, [#allocation4], %s2244_s18, %s2244_s18, %s2245_s19  }
 0x267   :  { %2228 = dma.done.wait [#allocation4], 512  }
 0x268   :  { %2229 = vsyncadd [#allocation4], 4294966784 }
 0x269   :  { %1964 = vsyncpa [#allocation3], 1 }
 0x26a   :  { %1965 = vsyncpa [#allocation6], 1 }
 0x26b   :  { %1966 = vsyncpa [#allocation9], 1 }
 0x26c   :  { %1967 = vsyncpa [#allocation4], 1 }

</bundles_post_ra>
